<compile_context>
chip_gen: v7x
topology: tpu7x:2x2x1
jax: 0.10.0
libtpu: 0.0.40
codegen_flags: <defaults>
</compile_context>

<pallas_src>
import jax
import jax.numpy as jnp
from jax.experimental import pallas as pl
from jax.experimental.pallas import tpu as pltpu

EPS = 1e-5  # PyTorch BatchNorm1d default eps

MAIN_DIM = 6
MESS_DIM = 256
CODE_DIM = 768
CAT_DIM = MAIN_DIM + MESS_DIM + 2 * CODE_DIM   # 1798 (not-is_full path)
H1 = 128
H2 = 16

MAIN_PAD = 128                                  # main segment padded 6 -> 128
CAT_PAD = MAIN_PAD + MESS_DIM + 2 * CODE_DIM    # 1920 = 15 * 128
# packed (lane-aligned) segment offsets in the 1920-wide feature layout
PK_MAIN, PK_MESS, PK_PREV, PK_CURR = 0, 128, 384, 1152
SEGMENTS = (
    (PK_MAIN, MAIN_PAD),   # (0,    128)
    (PK_MESS, MESS_DIM),   # (128,  256)
    (PK_PREV, CODE_DIM),   # (384,  768)
    (PK_CURR, CODE_DIM),   # (1152, 768)
)


def head_kernel(
    xm_ref,     # (B, 128)   main_data zero-padded to 128 lanes, f32 (VMEM)
    xs_ref,     # (B, 256)   mess_vec, f32 (VMEM)
    xp_ref,     # (B, 768)   prev_embedding, f32 (VMEM)
    xc_ref,     # (B, 768)   curr_embedding, f32 (VMEM)
    bn0_ref,    # (2, 1920)  row0 = bn0 gamma, row1 = bn0 beta (packed layout)
    w1_hbm,     # (1920, 128) fc1 weight, bf16, memory_space=pl.ANY (HBM)
    w2_ref,     # (128, 16)  fc2 weight, f32 (VMEM)
    head_ref,   # (8, 128)   rows: bb1, g1, b1, bb2, g2, b2, wc, bc (lane 0)
    out_ref,    # (B, 1)
    w1_buf,     # scratch VMEM (2, 768, 128) bf16 — double buffer for w1 rows
    sem,        # scratch DMA semaphores (2,)
):
    def bn(x, g, b):
        # train-mode BatchNorm1d: batch statistics, biased variance
        mu = jnp.mean(x, axis=0, keepdims=True)
        d = x - mu
        var = jnp.mean(d * d, axis=0, keepdims=True)
        return d * jax.lax.rsqrt(var + EPS) * g + b

    x_refs = (xm_ref, xs_ref, xp_ref, xc_ref)

    def start_copy(k, slot):
        lo, size = SEGMENTS[k]
        cp = pltpu.make_async_copy(
            w1_hbm.at[pl.ds(lo, size), :],
            w1_buf.at[slot, pl.ds(0, size), :],
            sem.at[slot],
        )
        cp.start()
        return cp

    # fc1 = sum of four MXU dots against 128-aligned row blocks of packed w1.
    # Padded main columns normalize to 0 and hit zero w1 rows / zero gamma,
    # beta -> mathematically inert.
    copies = [start_copy(0, 0)]
    acc = head_ref[0:1, :]          # fc1 bias, broadcasts up to (B, 128)
    for k in range(4):              # static Python unroll
        slot = k & 1
        lo, size = SEGMENTS[k]
        # bn of segment k does not need w1 -> runs under segment k's DMA
        xb = bn(x_refs[k][...], bn0_ref[0:1, lo:lo + size],
                bn0_ref[1:2, lo:lo + size])
        copies[k].wait()
        if k + 1 < 4:
            # prefetch segment k+1 while the MXU chews on segment k
            copies.append(start_copy(k + 1, 1 - slot))
        w1_blk = w1_buf[slot, 0:size, :]                   # (size, 128) bf16
        acc = acc + jnp.dot(xb.astype(w1_blk.dtype), w1_blk,
                            preferred_element_type=jnp.float32)

    # bn1 + relu
    h1 = jnp.maximum(bn(acc, head_ref[1:2, :], head_ref[2:3, :]), 0.0)

    # fc2 (MXU) + bn2 + relu — all head params are lane-0 slices of the slab
    h2 = jnp.dot(h1, w2_ref[...], preferred_element_type=jnp.float32) \
        + head_ref[3:4, 0:H2]
    h2 = jnp.maximum(bn(h2, head_ref[4:5, 0:H2], head_ref[5:6, 0:H2]), 0.0)

    # classifier: VPU broadcast-multiply + lane reduction (skip 16x1 MXU matmul)
    out = jnp.sum(h2 * head_ref[6:7, 0:H2], axis=-1, keepdims=True) \
        + head_ref[7:8, 0:1]
    out_ref[...] = out


def strong_sber_net_forward(main_data, mess_vec, prev_emb, curr_emb, packed):
    B = main_data.shape[0]
    assert mess_vec.shape == (B, MESS_DIM)
    assert prev_emb.shape == (B, CODE_DIM) and curr_emb.shape == (B, CODE_DIM)

    # only the tiny (B,6) segment is padded (lane alignment); no (B,1798) concat
    main_p = jnp.pad(main_data.astype(jnp.float32),
                     ((0, 0), (0, MAIN_PAD - MAIN_DIM)))

    operands = (
        main_p, mess_vec, prev_emb, curr_emb,
        packed["bn0"], packed["w1"], packed["w2"], packed["head"],
    )

    def full_spec(a):
        zeros = (0,) * a.ndim
        return pl.BlockSpec(a.shape, lambda zeros=zeros: zeros)  # whole array in VMEM

    in_specs = [
        full_spec(main_p), full_spec(mess_vec),
        full_spec(prev_emb), full_spec(curr_emb),
        full_spec(packed["bn0"]),
        pl.BlockSpec(memory_space=pl.ANY),       # w1 stays in HBM, manual DMA
        full_spec(packed["w2"]), full_spec(packed["head"]),
    ]

    return pl.pallas_call(
        head_kernel,
        out_shape=jax.ShapeDtypeStruct((B, 1), jnp.float32),
        grid=(),
        in_specs=in_specs,
        out_specs=pl.BlockSpec((B, 1), lambda: (0, 0)),
        scratch_shapes=[
            pltpu.VMEM((2, CODE_DIM, H1), jnp.bfloat16),   # w1 double buffer
            pltpu.SemaphoreType.DMA((2,)),
        ],
        compiler_params=pltpu.CompilerParams(vmem_limit_bytes=16 * 1024 * 1024),
    )(*operands)


def pack_params(p, w1_dtype=jnp.bfloat16):
    """One-time host-side repack into lane-aligned, DMA-dense slabs."""
    # --- bn0 gamma/beta -> (2, 1920) with 128-aligned segments ---------------
    def split_feat(v):  # (1, 1798) -> per-segment views
        return v[:, :6], v[:, 6:262], v[:, 262:1030], v[:, 1030:1798]

    def pad_main_cols(v):  # (1, 6) -> (1, 128), zero pad (keeps padding inert)
        return jnp.pad(v, ((0, 0), (0, MAIN_PAD - MAIN_DIM)))

    gm, gs, gp, gc = split_feat(p["g0"])
    bm, bs, bp, bcu = split_feat(p["b0"])
    g_row = jnp.concatenate([pad_main_cols(gm), gs, gp, gc], axis=1)
    b_row = jnp.concatenate([pad_main_cols(bm), bs, bp, bcu], axis=1)
    bn0_pk = jnp.concatenate([g_row, b_row], axis=0)            # (2, 1920)

    # --- w1 (1798,128) -> (1920,128), zero rows for main padding, bf16 -------
    # TODO(synk): fp8 (v7x) / int8 + per-column scales (v5e/v6e) would halve
    # this again; needs revalidation against the precision-matched reference.
    w1 = p["w1"]
    w1_pk = jnp.concatenate(
        [jnp.pad(w1[:6], ((0, MAIN_PAD - MAIN_DIM), (0, 0))),
         w1[6:262], w1[262:1030], w1[1030:1798]],
        axis=0).astype(w1_dtype)                                # (1920, 128)

    # --- tiny head params -> one (8, 128) slab, one parameter per row --------
    head = jnp.zeros((8, H1), jnp.float32)
    head = head.at[0, :].set(p["bb1"][0])
    head = head.at[1, :].set(p["g1"][0])
    head = head.at[2, :].set(p["b1"][0])
    head = head.at[3, 0:H2].set(p["bb2"][0])
    head = head.at[4, 0:H2].set(p["g2"][0])
    head = head.at[5, 0:H2].set(p["b2"][0])
    head = head.at[6, 0:H2].set(p["wc"].reshape(H2))
    head = head.at[7, 0:1].set(p["bc"][0])

    return {"bn0": bn0_pk, "w1": w1_pk, "w2": p["w2"], "head": head}


def init_params(key):
    ks = jax.random.split(key, 3)

    def linear(k, fan_in, fan_out):
        bound = 1.0 / jnp.sqrt(fan_in)
        kw, kb = jax.random.split(k)
        w = jax.random.uniform(kw, (fan_in, fan_out), jnp.float32, -bound, bound)
        b = jax.random.uniform(kb, (1, fan_out), jnp.float32, -bound, bound)
        return w, b

    w1, bb1 = linear(ks[0], CAT_DIM, H1)
    w2, bb2 = linear(ks[1], H1, H2)
    wc, bc = linear(ks[2], H2, 1)
    return {
        # BatchNorm affine params: PyTorch default init gamma=1, beta=0
        "g0": jnp.ones((1, CAT_DIM), jnp.float32),
        "b0": jnp.zeros((1, CAT_DIM), jnp.float32),
        "w1": w1, "bb1": bb1,
        "g1": jnp.ones((1, H1), jnp.float32),
        "b1": jnp.zeros((1, H1), jnp.float32),
        "w2": w2, "bb2": bb2,
        "g2": jnp.ones((1, H2), jnp.float32),
        "b2": jnp.zeros((1, H2), jnp.float32),
        "wc": wc, "bc": bc,
    }


def reference_forward(main_data, mess_vec, prev_emb, curr_emb, p,
                      w1_dtype=jnp.float32):
    """Pure-JAX module semantics. w1_dtype=bfloat16 mirrors the kernel's
    intentional fc1 weight/activation quantization at the MXU."""
    x = jnp.concatenate([main_data, mess_vec, prev_emb, curr_emb], axis=1)

    def bn(h, g, b):
        mu = jnp.mean(h, axis=0, keepdims=True)
        var = jnp.mean((h - mu) ** 2, axis=0, keepdims=True)
        return (h - mu) * jax.lax.rsqrt(var + EPS) * g + b

    dot = lambda a, w: jnp.dot(a, w, precision=jax.lax.Precision.HIGHEST)

    h = bn(x, p["g0"], p["b0"])
    w1 = p["w1"]
    if w1_dtype != jnp.float32:
        h = h.astype(w1_dtype).astype(jnp.float32)
        w1 = w1.astype(w1_dtype).astype(jnp.float32)
    h = dot(h, w1) + p["bb1"]
    h = jnp.maximum(bn(h, p["g1"], p["b1"]), 0.0)
    h = dot(h, p["w2"]) + p["bb2"]
    h = jnp.maximum(bn(h, p["g2"], p["b2"]), 0.0)
    return dot(h, p["wc"]) + p["bc"]


if __name__ == "__main__":
    key = jax.random.PRNGKey(0)
    k_in, k_par = jax.random.split(key)
    k1, k2, k3, k4 = jax.random.split(k_in, 4)

    B = 8
    main_data = jax.random.normal(k1, (B, MAIN_DIM), jnp.float32)
    mess_vec = jax.random.normal(k2, (B, MESS_DIM), jnp.float32)
    prev_emb = jax.random.normal(k3, (B, CODE_DIM), jnp.float32)
    curr_emb = jax.random.normal(k4, (B, CODE_DIM), jnp.float32)

    params = init_params(k_par)
    packed = pack_params(params, w1_dtype=jnp.bfloat16)

    out = strong_sber_net_forward(main_data, mess_vec, prev_emb, curr_emb, packed)
    out = jax.block_until_ready(out)
    assert out.shape == (B, 1)
    assert bool(jnp.all(jnp.isfinite(out)))

    # tight check vs a precision-matched reference (validates the kernel math)
    ref_matched = reference_forward(main_data, mess_vec, prev_emb, curr_emb,
                                    params, w1_dtype=jnp.bfloat16)
    assert jnp.allclose(out, ref_matched, atol=1e-2, rtol=1e-2), (out, ref_matched)

    # loose check vs the pure-f32 module semantics (documents the intentional
    # bf16 fc1-weight quantization, amplified by train-mode BN at B=8)
    ref_f32 = reference_forward(main_data, mess_vec, prev_emb, curr_emb, params)
    assert jnp.allclose(out, ref_f32, atol=1e-1, rtol=1e-1), (out, ref_f32)

    print("KERNEL_OK")
</pallas_src>

<mosaic_0001>
module attributes {stable_mosaic.version = 11 : i64} {
  func.func @head_kernel(%arg0: memref<8x128xf32, #tpu.memory_space<vmem>>, %arg1: memref<8x256xf32, #tpu.memory_space<vmem>>, %arg2: memref<8x768xf32, #tpu.memory_space<vmem>>, %arg3: memref<8x768xf32, #tpu.memory_space<vmem>>, %arg4: memref<2x1920xf32, #tpu.memory_space<vmem>>, %arg5: memref<1920x128xbf16, #tpu.memory_space<any>>, %arg6: memref<128x16xf32, #tpu.memory_space<vmem>>, %arg7: memref<8x128xf32, #tpu.memory_space<vmem>>, %arg8: memref<8x1xf32, #tpu.memory_space<vmem>>, %arg9: memref<2x768x128xbf16, #tpu.memory_space<vmem>>, %arg10: memref<2x!tpu.dma_semaphore, #tpu.memory_space<semaphore_mem>>) attributes {dimension_semantics = [], scalar_prefetch = 0 : i64, scratch_operands = 2 : i64, tpu.core_type = #tpu.core_type<tc>} {
    %c0_i32 = arith.constant 0 : i32
    %c0_i32_0 = arith.constant 0 : i32
    %c0_i32_1 = arith.constant 0 : i32
    %c0_i32_2 = arith.constant 0 : i32
    %0 = tpu.memref_slice %arg5[%c0_i32_1, %c0_i32_2] : memref<1920x128xbf16, #tpu.memory_space<any>> -> memref<128x128xbf16, #tpu.memory_space<any>>
    %c0_i32_3 = arith.constant 0 : i32
    %c0_i32_4 = arith.constant 0 : i32
    %1 = tpu.memref_slice %arg9[%c0_i32, %c0_i32_3, %c0_i32_4] : memref<2x768x128xbf16, #tpu.memory_space<vmem>> -> memref<1x128x128xbf16, #tpu.memory_space<vmem>>
    %2 = tpu.memref_squeeze %1 : memref<1x128x128xbf16, #tpu.memory_space<vmem>> -> memref<128x128xbf16, #tpu.memory_space<vmem>>
    %3 = tpu.memref_slice %arg10[%c0_i32_0] : memref<2x!tpu.dma_semaphore, #tpu.memory_space<semaphore_mem>> -> memref<1x!tpu.dma_semaphore, #tpu.memory_space<semaphore_mem>>
    %4 = tpu.memref_squeeze %3 : memref<1x!tpu.dma_semaphore, #tpu.memory_space<semaphore_mem>> -> memref<!tpu.dma_semaphore, #tpu.memory_space<semaphore_mem>>
    tpu.enqueue_dma source(%0 : memref<128x128xbf16, #tpu.memory_space<any>>) target(%2 : memref<128x128xbf16, #tpu.memory_space<vmem>>) target_semaphore(%4 : memref<!tpu.dma_semaphore, #tpu.memory_space<semaphore_mem>>)
    %c0 = arith.constant 0 : index
    %c0_5 = arith.constant 0 : index
    %5 = vector.load %arg7[%c0, %c0_5] : memref<8x128xf32, #tpu.memory_space<vmem>>, vector<1x128xf32>
    %c0_6 = arith.constant 0 : index
    %c0_7 = arith.constant 0 : index
    %6 = vector.load %arg0[%c0_6, %c0_7] : memref<8x128xf32, #tpu.memory_space<vmem>>, vector<8x128xf32>
    %c0_8 = arith.constant 0 : index
    %c0_9 = arith.constant 0 : index
    %7 = vector.load %arg4[%c0_8, %c0_9] : memref<2x1920xf32, #tpu.memory_space<vmem>>, vector<1x128xf32>
    %c1 = arith.constant 1 : index
    %c0_10 = arith.constant 0 : index
    %8 = vector.load %arg4[%c1, %c0_10] : memref<2x1920xf32, #tpu.memory_space<vmem>>, vector<1x128xf32>
    %cst = arith.constant dense<0.000000e+00> : vector<128xf32>
    %9 = vector.multi_reduction <add>, %6, %cst [0] : vector<8x128xf32> to vector<128xf32>
    %10 = vector.shape_cast %9 : vector<128xf32> to vector<1x128xf32>
    %cst_11 = arith.constant 8.000000e+00 : f32
    %11 = vector.broadcast %cst_11 : f32 to vector<1x128xf32>
    %12 = arith.divf %10, %11 : vector<1x128xf32>
    %13 = vector.broadcast %12 : vector<1x128xf32> to vector<8x128xf32>
    %14 = arith.subf %6, %13 : vector<8x128xf32>
    %15 = arith.mulf %14, %14 : vector<8x128xf32>
    %cst_12 = arith.constant dense<0.000000e+00> : vector<128xf32>
    %16 = vector.multi_reduction <add>, %15, %cst_12 [0] : vector<8x128xf32> to vector<128xf32>
    %17 = vector.shape_cast %16 : vector<128xf32> to vector<1x128xf32>
    %cst_13 = arith.constant 8.000000e+00 : f32
    %18 = vector.broadcast %cst_13 : f32 to vector<1x128xf32>
    %19 = arith.divf %17, %18 : vector<1x128xf32>
    %cst_14 = arith.constant 9.99999974E-6 : f32
    %20 = vector.broadcast %cst_14 : f32 to vector<1x128xf32>
    %21 = arith.addf %19, %20 : vector<1x128xf32>
    %22 = math.rsqrt %21 : vector<1x128xf32>
    %23 = vector.broadcast %22 : vector<1x128xf32> to vector<8x128xf32>
    %24 = arith.mulf %14, %23 : vector<8x128xf32>
    %25 = vector.broadcast %7 : vector<1x128xf32> to vector<8x128xf32>
    %26 = arith.mulf %24, %25 : vector<8x128xf32>
    %27 = vector.broadcast %8 : vector<1x128xf32> to vector<8x128xf32>
    %28 = arith.addf %26, %27 : vector<8x128xf32>
    %c0_i32_15 = arith.constant 0 : i32
    %c0_i32_16 = arith.constant 0 : i32
    %c0_i32_17 = arith.constant 0 : i32
    %c0_i32_18 = arith.constant 0 : i32
    %29 = tpu.memref_slice %arg5[%c0_i32_17, %c0_i32_18] : memref<1920x128xbf16, #tpu.memory_space<any>> -> memref<128x128xbf16, #tpu.memory_space<any>>
    %c0_i32_19 = arith.constant 0 : i32
    %c0_i32_20 = arith.constant 0 : i32
    %30 = tpu.memref_slice %arg9[%c0_i32_15, %c0_i32_19, %c0_i32_20] : memref<2x768x128xbf16, #tpu.memory_space<vmem>> -> memref<1x128x128xbf16, #tpu.memory_space<vmem>>
    %31 = tpu.memref_squeeze %30 : memref<1x128x128xbf16, #tpu.memory_space<vmem>> -> memref<128x128xbf16, #tpu.memory_space<vmem>>
    %32 = tpu.memref_slice %arg10[%c0_i32_16] : memref<2x!tpu.dma_semaphore, #tpu.memory_space<semaphore_mem>> -> memref<1x!tpu.dma_semaphore, #tpu.memory_space<semaphore_mem>>
    %33 = tpu.memref_squeeze %32 : memref<1x!tpu.dma_semaphore, #tpu.memory_space<semaphore_mem>> -> memref<!tpu.dma_semaphore, #tpu.memory_space<semaphore_mem>>
    tpu.wait_dma2 semaphore(%33 : memref<!tpu.dma_semaphore, #tpu.memory_space<semaphore_mem>>) src(%29 : memref<128x128xbf16, #tpu.memory_space<any>>) dst(%31 : memref<128x128xbf16, #tpu.memory_space<vmem>>)
    %c1_i32 = arith.constant 1 : i32
    %c1_i32_21 = arith.constant 1 : i32
    %c128_i32 = arith.constant 128 : i32
    %c0_i32_22 = arith.constant 0 : i32
    %34 = tpu.memref_slice %arg5[%c128_i32, %c0_i32_22] : memref<1920x128xbf16, #tpu.memory_space<any>> -> memref<256x128xbf16, #tpu.memory_space<any>>
    %c0_i32_23 = arith.constant 0 : i32
    %c0_i32_24 = arith.constant 0 : i32
    %35 = tpu.memref_slice %arg9[%c1_i32, %c0_i32_23, %c0_i32_24] : memref<2x768x128xbf16, #tpu.memory_space<vmem>> -> memref<1x256x128xbf16, #tpu.memory_space<vmem>>
    %36 = tpu.memref_squeeze %35 : memref<1x256x128xbf16, #tpu.memory_space<vmem>> -> memref<256x128xbf16, #tpu.memory_space<vmem>>
    %37 = tpu.memref_slice %arg10[%c1_i32_21] : memref<2x!tpu.dma_semaphore, #tpu.memory_space<semaphore_mem>> -> memref<1x!tpu.dma_semaphore, #tpu.memory_space<semaphore_mem>>
    %38 = tpu.memref_squeeze %37 : memref<1x!tpu.dma_semaphore, #tpu.memory_space<semaphore_mem>> -> memref<!tpu.dma_semaphore, #tpu.memory_space<semaphore_mem>>
    tpu.enqueue_dma source(%34 : memref<256x128xbf16, #tpu.memory_space<any>>) target(%36 : memref<256x128xbf16, #tpu.memory_space<vmem>>) target_semaphore(%38 : memref<!tpu.dma_semaphore, #tpu.memory_space<semaphore_mem>>)
    %c0_25 = arith.constant 0 : index
    %c0_26 = arith.constant 0 : index
    %c0_27 = arith.constant 0 : index
    %39 = vector.load %arg9[%c0_25, %c0_26, %c0_27] : memref<2x768x128xbf16, #tpu.memory_space<vmem>>, vector<1x128x128xbf16>
    %40 = vector.shape_cast %39 : vector<1x128x128xbf16> to vector<128x128xbf16>
    %41 = arith.truncf %28 : vector<8x128xf32> to vector<8x128xbf16>
    %cst_28 = arith.constant dense<0.000000e+00> : vector<8x128xf32>
    %42 = tpu.matmul %41, %40, %cst_28 {dimension_numbers = #tpu.dot_dimension_numbers<[1], [0], [0], [1], [0, 0, 1, 1], [], []>} : vector<8x128xbf16>, vector<128x128xbf16>, vector<8x128xf32> -> vector<8x128xf32>
    %43 = vector.broadcast %5 : vector<1x128xf32> to vector<8x128xf32>
    %44 = arith.addf %43, %42 : vector<8x128xf32>
    %c0_29 = arith.constant 0 : index
    %c0_30 = arith.constant 0 : index
    %45 = vector.load %arg1[%c0_29, %c0_30] : memref<8x256xf32, #tpu.memory_space<vmem>>, vector<8x256xf32>
    %c0_31 = arith.constant 0 : index
    %c128 = arith.constant 128 : index
    %46 = vector.load %arg4[%c0_31, %c128] : memref<2x1920xf32, #tpu.memory_space<vmem>>, vector<1x256xf32>
    %c1_32 = arith.constant 1 : index
    %c128_33 = arith.constant 128 : index
    %47 = vector.load %arg4[%c1_32, %c128_33] : memref<2x1920xf32, #tpu.memory_space<vmem>>, vector<1x256xf32>
    %cst_34 = arith.constant dense<0.000000e+00> : vector<256xf32>
    %48 = vector.multi_reduction <add>, %45, %cst_34 [0] : vector<8x256xf32> to vector<256xf32>
    %49 = vector.shape_cast %48 : vector<256xf32> to vector<1x256xf32>
    %cst_35 = arith.constant 8.000000e+00 : f32
    %50 = vector.broadcast %cst_35 : f32 to vector<1x256xf32>
    %51 = arith.divf %49, %50 : vector<1x256xf32>
    %52 = vector.broadcast %51 : vector<1x256xf32> to vector<8x256xf32>
    %53 = arith.subf %45, %52 : vector<8x256xf32>
    %54 = arith.mulf %53, %53 : vector<8x256xf32>
    %cst_36 = arith.constant dense<0.000000e+00> : vector<256xf32>
    %55 = vector.multi_reduction <add>, %54, %cst_36 [0] : vector<8x256xf32> to vector<256xf32>
    %56 = vector.shape_cast %55 : vector<256xf32> to vector<1x256xf32>
    %cst_37 = arith.constant 8.000000e+00 : f32
    %57 = vector.broadcast %cst_37 : f32 to vector<1x256xf32>
    %58 = arith.divf %56, %57 : vector<1x256xf32>
    %cst_38 = arith.constant 9.99999974E-6 : f32
    %59 = vector.broadcast %cst_38 : f32 to vector<1x256xf32>
    %60 = arith.addf %58, %59 : vector<1x256xf32>
    %61 = math.rsqrt %60 : vector<1x256xf32>
    %62 = vector.broadcast %61 : vector<1x256xf32> to vector<8x256xf32>
    %63 = arith.mulf %53, %62 : vector<8x256xf32>
    %64 = vector.broadcast %46 : vector<1x256xf32> to vector<8x256xf32>
    %65 = arith.mulf %63, %64 : vector<8x256xf32>
    %66 = vector.broadcast %47 : vector<1x256xf32> to vector<8x256xf32>
    %67 = arith.addf %65, %66 : vector<8x256xf32>
    %c1_i32_39 = arith.constant 1 : i32
    %c1_i32_40 = arith.constant 1 : i32
    %c128_i32_41 = arith.constant 128 : i32
    %c0_i32_42 = arith.constant 0 : i32
    %68 = tpu.memref_slice %arg5[%c128_i32_41, %c0_i32_42] : memref<1920x128xbf16, #tpu.memory_space<any>> -> memref<256x128xbf16, #tpu.memory_space<any>>
    %c0_i32_43 = arith.constant 0 : i32
    %c0_i32_44 = arith.constant 0 : i32
    %69 = tpu.memref_slice %arg9[%c1_i32_39, %c0_i32_43, %c0_i32_44] : memref<2x768x128xbf16, #tpu.memory_space<vmem>> -> memref<1x256x128xbf16, #tpu.memory_space<vmem>>
    %70 = tpu.memref_squeeze %69 : memref<1x256x128xbf16, #tpu.memory_space<vmem>> -> memref<256x128xbf16, #tpu.memory_space<vmem>>
    %71 = tpu.memref_slice %arg10[%c1_i32_40] : memref<2x!tpu.dma_semaphore, #tpu.memory_space<semaphore_mem>> -> memref<1x!tpu.dma_semaphore, #tpu.memory_space<semaphore_mem>>
    %72 = tpu.memref_squeeze %71 : memref<1x!tpu.dma_semaphore, #tpu.memory_space<semaphore_mem>> -> memref<!tpu.dma_semaphore, #tpu.memory_space<semaphore_mem>>
    tpu.wait_dma2 semaphore(%72 : memref<!tpu.dma_semaphore, #tpu.memory_space<semaphore_mem>>) src(%68 : memref<256x128xbf16, #tpu.memory_space<any>>) dst(%70 : memref<256x128xbf16, #tpu.memory_space<vmem>>)
    %c0_i32_45 = arith.constant 0 : i32
    %c0_i32_46 = arith.constant 0 : i32
    %c384_i32 = arith.constant 384 : i32
    %c0_i32_47 = arith.constant 0 : i32
    %73 = tpu.memref_slice %arg5[%c384_i32, %c0_i32_47] : memref<1920x128xbf16, #tpu.memory_space<any>> -> memref<768x128xbf16, #tpu.memory_space<any>>
    %c0_i32_48 = arith.constant 0 : i32
    %c0_i32_49 = arith.constant 0 : i32
    %74 = tpu.memref_slice %arg9[%c0_i32_45, %c0_i32_48, %c0_i32_49] : memref<2x768x128xbf16, #tpu.memory_space<vmem>> -> memref<1x768x128xbf16, #tpu.memory_space<vmem>>
    %75 = tpu.memref_squeeze %74 : memref<1x768x128xbf16, #tpu.memory_space<vmem>> -> memref<768x128xbf16, #tpu.memory_space<vmem>>
    %76 = tpu.memref_slice %arg10[%c0_i32_46] : memref<2x!tpu.dma_semaphore, #tpu.memory_space<semaphore_mem>> -> memref<1x!tpu.dma_semaphore, #tpu.memory_space<semaphore_mem>>
    %77 = tpu.memref_squeeze %76 : memref<1x!tpu.dma_semaphore, #tpu.memory_space<semaphore_mem>> -> memref<!tpu.dma_semaphore, #tpu.memory_space<semaphore_mem>>
    tpu.enqueue_dma source(%73 : memref<768x128xbf16, #tpu.memory_space<any>>) target(%75 : memref<768x128xbf16, #tpu.memory_space<vmem>>) target_semaphore(%77 : memref<!tpu.dma_semaphore, #tpu.memory_space<semaphore_mem>>)
    %c1_50 = arith.constant 1 : index
    %c0_51 = arith.constant 0 : index
    %c0_52 = arith.constant 0 : index
    %78 = vector.load %arg9[%c1_50, %c0_51, %c0_52] : memref<2x768x128xbf16, #tpu.memory_space<vmem>>, vector<1x256x128xbf16>
    %79 = vector.shape_cast %78 : vector<1x256x128xbf16> to vector<256x128xbf16>
    %80 = arith.truncf %67 : vector<8x256xf32> to vector<8x256xbf16>
    %cst_53 = arith.constant dense<0.000000e+00> : vector<8x128xf32>
    %81 = tpu.matmul %80, %79, %cst_53 {dimension_numbers = #tpu.dot_dimension_numbers<[1], [0], [0], [1], [0, 0, 1, 1], [], []>} : vector<8x256xbf16>, vector<256x128xbf16>, vector<8x128xf32> -> vector<8x128xf32>
    %82 = arith.addf %44, %81 : vector<8x128xf32>
    %c0_54 = arith.constant 0 : index
    %c0_55 = arith.constant 0 : index
    %83 = vector.load %arg2[%c0_54, %c0_55] : memref<8x768xf32, #tpu.memory_space<vmem>>, vector<8x768xf32>
    %c0_56 = arith.constant 0 : index
    %c384 = arith.constant 384 : index
    %84 = vector.load %arg4[%c0_56, %c384] : memref<2x1920xf32, #tpu.memory_space<vmem>>, vector<1x768xf32>
    %c1_57 = arith.constant 1 : index
    %c384_58 = arith.constant 384 : index
    %85 = vector.load %arg4[%c1_57, %c384_58] : memref<2x1920xf32, #tpu.memory_space<vmem>>, vector<1x768xf32>
    %cst_59 = arith.constant dense<0.000000e+00> : vector<768xf32>
    %86 = vector.multi_reduction <add>, %83, %cst_59 [0] : vector<8x768xf32> to vector<768xf32>
    %87 = vector.shape_cast %86 : vector<768xf32> to vector<1x768xf32>
    %cst_60 = arith.constant 8.000000e+00 : f32
    %88 = vector.broadcast %cst_60 : f32 to vector<1x768xf32>
    %89 = arith.divf %87, %88 : vector<1x768xf32>
    %90 = vector.broadcast %89 : vector<1x768xf32> to vector<8x768xf32>
    %91 = arith.subf %83, %90 : vector<8x768xf32>
    %92 = arith.mulf %91, %91 : vector<8x768xf32>
    %cst_61 = arith.constant dense<0.000000e+00> : vector<768xf32>
    %93 = vector.multi_reduction <add>, %92, %cst_61 [0] : vector<8x768xf32> to vector<768xf32>
    %94 = vector.shape_cast %93 : vector<768xf32> to vector<1x768xf32>
    %cst_62 = arith.constant 8.000000e+00 : f32
    %95 = vector.broadcast %cst_62 : f32 to vector<1x768xf32>
    %96 = arith.divf %94, %95 : vector<1x768xf32>
    %cst_63 = arith.constant 9.99999974E-6 : f32
    %97 = vector.broadcast %cst_63 : f32 to vector<1x768xf32>
    %98 = arith.addf %96, %97 : vector<1x768xf32>
    %99 = math.rsqrt %98 : vector<1x768xf32>
    %100 = vector.broadcast %99 : vector<1x768xf32> to vector<8x768xf32>
    %101 = arith.mulf %91, %100 : vector<8x768xf32>
    %102 = vector.broadcast %84 : vector<1x768xf32> to vector<8x768xf32>
    %103 = arith.mulf %101, %102 : vector<8x768xf32>
    %104 = vector.broadcast %85 : vector<1x768xf32> to vector<8x768xf32>
    %105 = arith.addf %103, %104 : vector<8x768xf32>
    %c0_i32_64 = arith.constant 0 : i32
    %c0_i32_65 = arith.constant 0 : i32
    %c384_i32_66 = arith.constant 384 : i32
    %c0_i32_67 = arith.constant 0 : i32
    %106 = tpu.memref_slice %arg5[%c384_i32_66, %c0_i32_67] : memref<1920x128xbf16, #tpu.memory_space<any>> -> memref<768x128xbf16, #tpu.memory_space<any>>
    %c0_i32_68 = arith.constant 0 : i32
    %c0_i32_69 = arith.constant 0 : i32
    %107 = tpu.memref_slice %arg9[%c0_i32_64, %c0_i32_68, %c0_i32_69] : memref<2x768x128xbf16, #tpu.memory_space<vmem>> -> memref<1x768x128xbf16, #tpu.memory_space<vmem>>
    %108 = tpu.memref_squeeze %107 : memref<1x768x128xbf16, #tpu.memory_space<vmem>> -> memref<768x128xbf16, #tpu.memory_space<vmem>>
    %109 = tpu.memref_slice %arg10[%c0_i32_65] : memref<2x!tpu.dma_semaphore, #tpu.memory_space<semaphore_mem>> -> memref<1x!tpu.dma_semaphore, #tpu.memory_space<semaphore_mem>>
    %110 = tpu.memref_squeeze %109 : memref<1x!tpu.dma_semaphore, #tpu.memory_space<semaphore_mem>> -> memref<!tpu.dma_semaphore, #tpu.memory_space<semaphore_mem>>
    tpu.wait_dma2 semaphore(%110 : memref<!tpu.dma_semaphore, #tpu.memory_space<semaphore_mem>>) src(%106 : memref<768x128xbf16, #tpu.memory_space<any>>) dst(%108 : memref<768x128xbf16, #tpu.memory_space<vmem>>)
    %c1_i32_70 = arith.constant 1 : i32
    %c1_i32_71 = arith.constant 1 : i32
    %c1152_i32 = arith.constant 1152 : i32
    %c0_i32_72 = arith.constant 0 : i32
    %111 = tpu.memref_slice %arg5[%c1152_i32, %c0_i32_72] : memref<1920x128xbf16, #tpu.memory_space<any>> -> memref<768x128xbf16, #tpu.memory_space<any>>
    %c0_i32_73 = arith.constant 0 : i32
    %c0_i32_74 = arith.constant 0 : i32
    %112 = tpu.memref_slice %arg9[%c1_i32_70, %c0_i32_73, %c0_i32_74] : memref<2x768x128xbf16, #tpu.memory_space<vmem>> -> memref<1x768x128xbf16, #tpu.memory_space<vmem>>
    %113 = tpu.memref_squeeze %112 : memref<1x768x128xbf16, #tpu.memory_space<vmem>> -> memref<768x128xbf16, #tpu.memory_space<vmem>>
    %114 = tpu.memref_slice %arg10[%c1_i32_71] : memref<2x!tpu.dma_semaphore, #tpu.memory_space<semaphore_mem>> -> memref<1x!tpu.dma_semaphore, #tpu.memory_space<semaphore_mem>>
    %115 = tpu.memref_squeeze %114 : memref<1x!tpu.dma_semaphore, #tpu.memory_space<semaphore_mem>> -> memref<!tpu.dma_semaphore, #tpu.memory_space<semaphore_mem>>
    tpu.enqueue_dma source(%111 : memref<768x128xbf16, #tpu.memory_space<any>>) target(%113 : memref<768x128xbf16, #tpu.memory_space<vmem>>) target_semaphore(%115 : memref<!tpu.dma_semaphore, #tpu.memory_space<semaphore_mem>>)
    %c0_75 = arith.constant 0 : index
    %c0_76 = arith.constant 0 : index
    %c0_77 = arith.constant 0 : index
    %116 = vector.load %arg9[%c0_75, %c0_76, %c0_77] : memref<2x768x128xbf16, #tpu.memory_space<vmem>>, vector<1x768x128xbf16>
    %117 = vector.shape_cast %116 : vector<1x768x128xbf16> to vector<768x128xbf16>
    %118 = arith.truncf %105 : vector<8x768xf32> to vector<8x768xbf16>
    %cst_78 = arith.constant dense<0.000000e+00> : vector<8x128xf32>
    %119 = tpu.matmul %118, %117, %cst_78 {dimension_numbers = #tpu.dot_dimension_numbers<[1], [0], [0], [1], [0, 0, 1, 1], [], []>} : vector<8x768xbf16>, vector<768x128xbf16>, vector<8x128xf32> -> vector<8x128xf32>
    %120 = arith.addf %82, %119 : vector<8x128xf32>
    %c0_79 = arith.constant 0 : index
    %c0_80 = arith.constant 0 : index
    %121 = vector.load %arg3[%c0_79, %c0_80] : memref<8x768xf32, #tpu.memory_space<vmem>>, vector<8x768xf32>
    %c0_81 = arith.constant 0 : index
    %c1152 = arith.constant 1152 : index
    %122 = vector.load %arg4[%c0_81, %c1152] : memref<2x1920xf32, #tpu.memory_space<vmem>>, vector<1x768xf32>
    %c1_82 = arith.constant 1 : index
    %c1152_83 = arith.constant 1152 : index
    %123 = vector.load %arg4[%c1_82, %c1152_83] : memref<2x1920xf32, #tpu.memory_space<vmem>>, vector<1x768xf32>
    %cst_84 = arith.constant dense<0.000000e+00> : vector<768xf32>
    %124 = vector.multi_reduction <add>, %121, %cst_84 [0] : vector<8x768xf32> to vector<768xf32>
    %125 = vector.shape_cast %124 : vector<768xf32> to vector<1x768xf32>
    %cst_85 = arith.constant 8.000000e+00 : f32
    %126 = vector.broadcast %cst_85 : f32 to vector<1x768xf32>
    %127 = arith.divf %125, %126 : vector<1x768xf32>
    %128 = vector.broadcast %127 : vector<1x768xf32> to vector<8x768xf32>
    %129 = arith.subf %121, %128 : vector<8x768xf32>
    %130 = arith.mulf %129, %129 : vector<8x768xf32>
    %cst_86 = arith.constant dense<0.000000e+00> : vector<768xf32>
    %131 = vector.multi_reduction <add>, %130, %cst_86 [0] : vector<8x768xf32> to vector<768xf32>
    %132 = vector.shape_cast %131 : vector<768xf32> to vector<1x768xf32>
    %cst_87 = arith.constant 8.000000e+00 : f32
    %133 = vector.broadcast %cst_87 : f32 to vector<1x768xf32>
    %134 = arith.divf %132, %133 : vector<1x768xf32>
    %cst_88 = arith.constant 9.99999974E-6 : f32
    %135 = vector.broadcast %cst_88 : f32 to vector<1x768xf32>
    %136 = arith.addf %134, %135 : vector<1x768xf32>
    %137 = math.rsqrt %136 : vector<1x768xf32>
    %138 = vector.broadcast %137 : vector<1x768xf32> to vector<8x768xf32>
    %139 = arith.mulf %129, %138 : vector<8x768xf32>
    %140 = vector.broadcast %122 : vector<1x768xf32> to vector<8x768xf32>
    %141 = arith.mulf %139, %140 : vector<8x768xf32>
    %142 = vector.broadcast %123 : vector<1x768xf32> to vector<8x768xf32>
    %143 = arith.addf %141, %142 : vector<8x768xf32>
    %c1_i32_89 = arith.constant 1 : i32
    %c1_i32_90 = arith.constant 1 : i32
    %c1152_i32_91 = arith.constant 1152 : i32
    %c0_i32_92 = arith.constant 0 : i32
    %144 = tpu.memref_slice %arg5[%c1152_i32_91, %c0_i32_92] : memref<1920x128xbf16, #tpu.memory_space<any>> -> memref<768x128xbf16, #tpu.memory_space<any>>
    %c0_i32_93 = arith.constant 0 : i32
    %c0_i32_94 = arith.constant 0 : i32
    %145 = tpu.memref_slice %arg9[%c1_i32_89, %c0_i32_93, %c0_i32_94] : memref<2x768x128xbf16, #tpu.memory_space<vmem>> -> memref<1x768x128xbf16, #tpu.memory_space<vmem>>
    %146 = tpu.memref_squeeze %145 : memref<1x768x128xbf16, #tpu.memory_space<vmem>> -> memref<768x128xbf16, #tpu.memory_space<vmem>>
    %147 = tpu.memref_slice %arg10[%c1_i32_90] : memref<2x!tpu.dma_semaphore, #tpu.memory_space<semaphore_mem>> -> memref<1x!tpu.dma_semaphore, #tpu.memory_space<semaphore_mem>>
    %148 = tpu.memref_squeeze %147 : memref<1x!tpu.dma_semaphore, #tpu.memory_space<semaphore_mem>> -> memref<!tpu.dma_semaphore, #tpu.memory_space<semaphore_mem>>
    tpu.wait_dma2 semaphore(%148 : memref<!tpu.dma_semaphore, #tpu.memory_space<semaphore_mem>>) src(%144 : memref<768x128xbf16, #tpu.memory_space<any>>) dst(%146 : memref<768x128xbf16, #tpu.memory_space<vmem>>)
    %c1_95 = arith.constant 1 : index
    %c0_96 = arith.constant 0 : index
    %c0_97 = arith.constant 0 : index
    %149 = vector.load %arg9[%c1_95, %c0_96, %c0_97] : memref<2x768x128xbf16, #tpu.memory_space<vmem>>, vector<1x768x128xbf16>
    %150 = vector.shape_cast %149 : vector<1x768x128xbf16> to vector<768x128xbf16>
    %151 = arith.truncf %143 : vector<8x768xf32> to vector<8x768xbf16>
    %cst_98 = arith.constant dense<0.000000e+00> : vector<8x128xf32>
    %152 = tpu.matmul %151, %150, %cst_98 {dimension_numbers = #tpu.dot_dimension_numbers<[1], [0], [0], [1], [0, 0, 1, 1], [], []>} : vector<8x768xbf16>, vector<768x128xbf16>, vector<8x128xf32> -> vector<8x128xf32>
    %153 = arith.addf %120, %152 : vector<8x128xf32>
    %c1_99 = arith.constant 1 : index
    %c0_100 = arith.constant 0 : index
    %154 = vector.load %arg7[%c1_99, %c0_100] : memref<8x128xf32, #tpu.memory_space<vmem>>, vector<1x128xf32>
    %c2 = arith.constant 2 : index
    %c0_101 = arith.constant 0 : index
    %155 = vector.load %arg7[%c2, %c0_101] : memref<8x128xf32, #tpu.memory_space<vmem>>, vector<1x128xf32>
    %cst_102 = arith.constant dense<0.000000e+00> : vector<128xf32>
    %156 = vector.multi_reduction <add>, %153, %cst_102 [0] : vector<8x128xf32> to vector<128xf32>
    %157 = vector.shape_cast %156 : vector<128xf32> to vector<1x128xf32>
    %cst_103 = arith.constant 8.000000e+00 : f32
    %158 = vector.broadcast %cst_103 : f32 to vector<1x128xf32>
    %159 = arith.divf %157, %158 : vector<1x128xf32>
    %160 = vector.broadcast %159 : vector<1x128xf32> to vector<8x128xf32>
    %161 = arith.subf %153, %160 : vector<8x128xf32>
    %162 = arith.mulf %161, %161 : vector<8x128xf32>
    %cst_104 = arith.constant dense<0.000000e+00> : vector<128xf32>
    %163 = vector.multi_reduction <add>, %162, %cst_104 [0] : vector<8x128xf32> to vector<128xf32>
    %164 = vector.shape_cast %163 : vector<128xf32> to vector<1x128xf32>
    %cst_105 = arith.constant 8.000000e+00 : f32
    %165 = vector.broadcast %cst_105 : f32 to vector<1x128xf32>
    %166 = arith.divf %164, %165 : vector<1x128xf32>
    %cst_106 = arith.constant 9.99999974E-6 : f32
    %167 = vector.broadcast %cst_106 : f32 to vector<1x128xf32>
    %168 = arith.addf %166, %167 : vector<1x128xf32>
    %169 = math.rsqrt %168 : vector<1x128xf32>
    %170 = vector.broadcast %169 : vector<1x128xf32> to vector<8x128xf32>
    %171 = arith.mulf %161, %170 : vector<8x128xf32>
    %172 = vector.broadcast %154 : vector<1x128xf32> to vector<8x128xf32>
    %173 = arith.mulf %171, %172 : vector<8x128xf32>
    %174 = vector.broadcast %155 : vector<1x128xf32> to vector<8x128xf32>
    %175 = arith.addf %173, %174 : vector<8x128xf32>
    %cst_107 = arith.constant 0.000000e+00 : f32
    %176 = vector.broadcast %cst_107 : f32 to vector<8x128xf32>
    %177 = arith.maximumf %175, %176 : vector<8x128xf32>
    %c0_108 = arith.constant 0 : index
    %c0_109 = arith.constant 0 : index
    %178 = vector.load %arg6[%c0_108, %c0_109] : memref<128x16xf32, #tpu.memory_space<vmem>>, vector<128x16xf32>
    %cst_110 = arith.constant dense<0.000000e+00> : vector<8x16xf32>
    %179 = tpu.matmul %177, %178, %cst_110 {dimension_numbers = #tpu.dot_dimension_numbers<[1], [0], [0], [1], [0, 0, 1, 1], [], []>} : vector<8x128xf32>, vector<128x16xf32>, vector<8x16xf32> -> vector<8x16xf32>
    %c3 = arith.constant 3 : index
    %c0_111 = arith.constant 0 : index
    %180 = vector.load %arg7[%c3, %c0_111] : memref<8x128xf32, #tpu.memory_space<vmem>>, vector<1x16xf32>
    %181 = vector.broadcast %180 : vector<1x16xf32> to vector<8x16xf32>
    %182 = arith.addf %179, %181 : vector<8x16xf32>
    %c4 = arith.constant 4 : index
    %c0_112 = arith.constant 0 : index
    %183 = vector.load %arg7[%c4, %c0_112] : memref<8x128xf32, #tpu.memory_space<vmem>>, vector<1x16xf32>
    %c5 = arith.constant 5 : index
    %c0_113 = arith.constant 0 : index
    %184 = vector.load %arg7[%c5, %c0_113] : memref<8x128xf32, #tpu.memory_space<vmem>>, vector<1x16xf32>
    %cst_114 = arith.constant dense<0.000000e+00> : vector<16xf32>
    %185 = vector.multi_reduction <add>, %182, %cst_114 [0] : vector<8x16xf32> to vector<16xf32>
    %186 = vector.shape_cast %185 : vector<16xf32> to vector<1x16xf32>
    %cst_115 = arith.constant 8.000000e+00 : f32
    %187 = vector.broadcast %cst_115 : f32 to vector<1x16xf32>
    %188 = arith.divf %186, %187 : vector<1x16xf32>
    %189 = vector.broadcast %188 : vector<1x16xf32> to vector<8x16xf32>
    %190 = arith.subf %182, %189 : vector<8x16xf32>
    %191 = arith.mulf %190, %190 : vector<8x16xf32>
    %cst_116 = arith.constant dense<0.000000e+00> : vector<16xf32>
    %192 = vector.multi_reduction <add>, %191, %cst_116 [0] : vector<8x16xf32> to vector<16xf32>
    %193 = vector.shape_cast %192 : vector<16xf32> to vector<1x16xf32>
    %cst_117 = arith.constant 8.000000e+00 : f32
    %194 = vector.broadcast %cst_117 : f32 to vector<1x16xf32>
    %195 = arith.divf %193, %194 : vector<1x16xf32>
    %cst_118 = arith.constant 9.99999974E-6 : f32
    %196 = vector.broadcast %cst_118 : f32 to vector<1x16xf32>
    %197 = arith.addf %195, %196 : vector<1x16xf32>
    %198 = math.rsqrt %197 : vector<1x16xf32>
    %199 = vector.broadcast %198 : vector<1x16xf32> to vector<8x16xf32>
    %200 = arith.mulf %190, %199 : vector<8x16xf32>
    %201 = vector.broadcast %183 : vector<1x16xf32> to vector<8x16xf32>
    %202 = arith.mulf %200, %201 : vector<8x16xf32>
    %203 = vector.broadcast %184 : vector<1x16xf32> to vector<8x16xf32>
    %204 = arith.addf %202, %203 : vector<8x16xf32>
    %cst_119 = arith.constant 0.000000e+00 : f32
    %205 = vector.broadcast %cst_119 : f32 to vector<8x16xf32>
    %206 = arith.maximumf %204, %205 : vector<8x16xf32>
    %c6 = arith.constant 6 : index
    %c0_120 = arith.constant 0 : index
    %207 = vector.load %arg7[%c6, %c0_120] : memref<8x128xf32, #tpu.memory_space<vmem>>, vector<1x16xf32>
    %208 = vector.broadcast %207 : vector<1x16xf32> to vector<8x16xf32>
    %209 = arith.mulf %206, %208 : vector<8x16xf32>
    %cst_121 = arith.constant dense<0.000000e+00> : vector<8xf32>
    %210 = vector.multi_reduction <add>, %209, %cst_121 [1] : vector<8x16xf32> to vector<8xf32>
    %211 = vector.shape_cast %210 : vector<8xf32> to vector<8x1xf32>
    %c7 = arith.constant 7 : index
    %c0_122 = arith.constant 0 : index
    %212 = vector.load %arg7[%c7, %c0_122] : memref<8x128xf32, #tpu.memory_space<vmem>>, vector<1x1xf32>
    %213 = vector.broadcast %212 : vector<1x1xf32> to vector<8x1xf32>
    %214 = arith.addf %211, %213 : vector<8x1xf32>
    %c0_123 = arith.constant 0 : index
    %c0_124 = arith.constant 0 : index
    %215 = vector.load %arg8[%c0_123, %c0_124] : memref<8x1xf32, #tpu.memory_space<vmem>>, vector<8x1xf32>
    tpu.vector_store %arg8[%c0_123, %c0_124], %214 {strides = array<i32>} : memref<8x1xf32, #tpu.memory_space<vmem>>, vector<8x1xf32>,
    return
  }
}

</mosaic_0001>

<bundles_post_ra>
// kernel: tpu_custom_call.1
= control target key start
LH: loop header
LB: loop body
LE: loop exit
PB: predicated region body
PF: predicated region fallthrough
CT: control target
= control target key end

     0   :  { %13 = vsyncpa [#allocation5], 0  ;;  %s1705_s27 = smov [#allocation4]   ;;  %s2244_s0 = inlined_call_operand.hbm [shape: f32[8,128], index: 0, kind: input, shape index: {}]   ;;  %s2245_s1 = inlined_call_operand.vmem [shape: f32[8,256], index: 1, kind: input, shape index: {}]   ;;  %s2246_s2 = inlined_call_operand.vmem [shape: f32[8,768], index: 2, kind: input, shape index: {}]   ;;  %s2247_s3 = inlined_call_operand.vmem [shape: f32[8,768], index: 3, kind: input, shape index: {}]   ;;  %s2248_s4 = inlined_call_operand.vmem [shape: f32[2,1920], index: 4, kind: input, shape index: {}]   ;;  %s2249_s5 = inlined_call_operand.hbm [shape: bf16[1920,128], index: 5, kind: input, shape index: {}]   ;;  %s2250_s6 = inlined_call_operand.vmem [shape: f32[128,16], index: 6, kind: input, shape index: {}]   ;;  %s2251_s7 = inlined_call_operand.vmem [shape: f32[8,128], index: 7, kind: input, shape index: {}]   ;;  %s2252_s8 = inlined_call_operand.vmem [shape: f32[8,1], index: 8, kind: output, shape index: {}]  }
   0x1   :  { %s20_s28 = sshll.u32 %s1705_s27, 4  ;;  %s1576_s9 = scalar_lea.hbm %s2244_s0, 128  ;;  %s21_s28 = int_to_ptr.vmem [resolvable:$true] %s20_s28 }
   0x2   :  { %p1577_p0 = scmp.ne.s32.totalorder %s2244_s0, %s1576_s9  ;;  %p1580_p1 = scmp.lt.u32.totalorder %s1576_s9, %s2244_s0 }
   0x4   :  { %p1582_p2 = pnand %p1580_p1, %p1577_p0 }
   0x6   :  { %1585 = shalt.err (!%p1582_p2)
}
   0x7   :  { %s1586_s14 = scalar_lea.vmem %s21_s28, 128  ;;  %p1591_p4 = scmp.lt.s32.totalorder %s21_s28, %s21_s28 }
   0x8   :  { %p1587_p3 = scmp.ne.s32.totalorder %s21_s28, %s1586_s14  ;;  %p1592_p5 = scmp.lt.s32.totalorder %s1586_s14, %s1586_s14 }
   0xa   :  { %p1593_p6 = por %p1592_p5, %p1591_p4 }
   0xc   :  { %p1594_p7 = pnand %p1593_p6, %p1587_p3 }
   0xe   :  { %1597 = shalt.err (!%p1594_p7)
}
   0xf   :  { %23 = dma.hbm_to_vmem [thread:$0]  %s2244_s0, 128, %s21_s28, [#allocation5]  }
  0x10   :  { %1695 = dma.done.wait [#allocation5], 128  }
  0x11   :  { %1696 = vsyncadd [#allocation5], 4294967168  ;;  %s1706_s17 = smov [#allocation2]   ;;  %s1773_s21 = scalar_lea.hbm %s2249_s5, 1024 }
  0x12   :  { %s47_s18 = sshll.u32 %s1706_s17, 4  ;;  %p1599_p8 = scmp.ne.s32.totalorder %s2249_s5, %s1773_s21  ;;  %s1768_s18 = int_to_ptr.vmem [resolvable:$true] %s47_s18 }
  0x13   :  { %s1782_s25 = scalar_lea.hbm %s2249_s5, 15360  ;;  %p1602_p10 = scmp.lt.u32.totalorder %s1773_s21, %s2249_s5 }
  0x14   :  { %p1601_p9 = scmp.lt.u32.totalorder %s1782_s25, %s1773_s21 }
  0x16   :  { %p1603_p11 = por %p1602_p10, %p1601_p9 }
  0x18   :  { %p1604_p12 = pnand %p1603_p11, %p1599_p8 }
  0x1a   :  { %1607 = shalt.err (!%p1604_p12)  }
  0x1b   :  { %s1608_s30 = scalar_lea.vmem %s1768_s18, 1024  ;;  %s1798_s9 = scalar_lea.vmem %s1768_s18, 12288 }
  0x1c   :  { %p1609_p13 = scmp.ne.s32.totalorder %s1768_s18, %s1608_s30  ;;  %p1613_p0 = scmp.lt.s32.totalorder %s1768_s18, %s1768_s18 }
  0x1d   :  { %p1614_p1 = scmp.lt.s32.totalorder %s1798_s9, %s1608_s30 }
  0x1f   :  { %p1615_p2 = por %p1614_p1, %p1613_p0 }
  0x21   :  { %p1616_p3 = pnand %p1615_p2, %p1609_p13 }
  0x23   :  { %1619 = shalt.err (!%p1616_p3)  }
  0x24   :  { %50 = dma.hbm_to_vmem [thread:$0]  %s2249_s5, 1024, %s1768_s18, [#allocation3]  ;;  %v1813_v0 = vld [vmem:[%s2251_s7] ss:$0 sm:$0xff]  ;;  %v1260_v22 = vld [vmem:[%s2248_s4 + $0x1] ss:$0 sm:$0xff] }
  0x25   :  { %v52_v1 = vld [vmem:[#allocation4] sm:$0xff] }
  0x26   :  { %v55_v2 = vrot.slane %v52_v1, 4  ;;  %v1259_v20 = vld [vmem:[%s2248_s4] ss:$0 sm:$0xff] }
  0x28   :  { %v56_v3 = vadd.f32 %v55_v2, %v52_v1 }
  0x2a   :  { %v57_v4 = vrot.slane %v56_v3, 2 }
  0x2c   :  { %v58_v5 = vadd.f32 %v57_v4, %v56_v3 }
  0x2e   :  { %v59_v6 = vrot.slane %v58_v5, 1 }
  0x30   :  { %v60_v7 = vadd.f32 %v59_v6, %v58_v5 }
  0x32   :  { %v62_v8 = vmul.f32 0.125, %v60_v7 }
  0x34   :  { %v63_v9 = vsub.f32 %v52_v1, %v62_v8 }
  0x36   :  { %v64_v10 = vmul.f32 %v63_v9, %v63_v9 }
  0x38   :  { %v65_v11 = vrot.slane %v64_v10, 4 }
  0x3a   :  { %v66_v12 = vadd.f32 %v65_v11, %v64_v10 }
  0x3c   :  { %v67_v13 = vrot.slane %v66_v12, 2 }
  0x3e   :  { %v68_v14 = vadd.f32 %v67_v13, %v66_v12 }
  0x40   :  { %v69_v15 = vrot.slane %v68_v14, 1 }
  0x42   :  { %v70_v16 = vadd.f32 %v69_v15, %v68_v14 }
  0x44   :  { %v71_v17 = vmul.f32 0.125, %v70_v16 }
  0x46   :  { %v72_v18 = vadd.f32 1e-05, %v71_v17 }
  0x48   :  { %1542 = vrsqrt.f32 %v72_v18 }
  0x52   :  { %v1543_v19 = vpop.eup %1542 }
  0x53   :  { %v74_v21 = vmul.f32 %v1543_v19, %v63_v9 }
  0x55   :  { %v79_v23 = vmul.f32 %v1259_v20, %v74_v21 }
  0x57   :  { %v1821_v24 = vadd.f32 %v1260_v22, %v79_v23 }
  0x58   :  { %1697 = dma.done.wait [#allocation3], 1024 }
  0x59   :  { %1698 = vsyncadd [#allocation3], 4294966272  ;;  %s1707_s19 = smov [#allocation2 + $0x180]   ;;  %v1708_v25 = vmov 0.0   ;;  %vm1709_vm0 = vmmov 0   ;;  %s1831_s0 = scalar_lea.hbm %s2249_s5, 3072 }
  0x5a   :  { %s99_s20 = sshll.u32 %s1707_s19, 4  ;;  %1457 = vmatprep.subr.bf16.mxu0 %v1708_v25  ;;  %1473 = vmatprep.mubr.msk.bf16.mxu0 %vm1709_vm0, %v1708_v25  ;;  %p1621_p4 = scmp.ne.s32.totalorder %s1773_s21, %s1831_s0  ;;  %s1826_s20 = int_to_ptr.vmem [resolvable:$true] %s99_s20 }
  0x5b   :  { %p1624_p5 = scmp.lt.u32.totalorder %s1782_s25, %s1831_s0  ;;  %p1626_p7 = scmp.lt.u32.totalorder %s1831_s0, %s1773_s21 }
  0x5d   :  { %p1625_p6 = por %p1624_p5, %p1602_p10 }
  0x5f   :  { %p1627_p8 = por %p1626_p7, %p1625_p6 }
  0x61   :  { %p1628_p9 = pnand %p1627_p8, %p1621_p4 }
  0x63   :  { %1631 = shalt.err (!%p1628_p9)  }
  0x64   :  { %s1632_s27 = scalar_lea.vmem %s1826_s20, 2048  ;;  %p1637_p12 = scmp.lt.s32.totalorder %s1826_s20, %s1768_s18 }
  0x65   :  { %p1633_p11 = scmp.ne.s32.totalorder %s1826_s20, %s1632_s27  ;;  %p1638_p13 = scmp.lt.s32.totalorder %s1798_s9, %s1632_s27 }
  0x67   :  { %p1639_p1 = por %p1638_p13, %p1637_p12 }
  0x69   :  { %p1640_p2 = pnand %p1639_p1, %p1633_p11 }
  0x6b   :  { %1643 = shalt.err (!%p1640_p2)  }
  0x6c   :  { %102 = dma.hbm_to_vmem [thread:$0]  %s1773_s21, 2048, %s1826_s20, [#allocation3 + $0x1]  ;;  %v157_v26 = vld [vmem:[%s2245_s1] sm:$0xff]  ;;  %v158_v27 = vld [vmem:[%s2245_s1 + $0x8] sm:$0xff]  ;;  %v111_v5 = vpack.c.bf16 %v1821_v24, %v1821_v24  ;;  %v202_v6 = vlaneseq }
  0x6d   :  { %v163_v28 = vrot.slane %v157_v26, 4  ;;  %v169_v29 = vrot.slane %v158_v27, 4  ;;  %v103_v32 = vld [vmem:[#allocation2] sm:$0xff]  ;;  %v104_v35 = vld [vmem:[#allocation2 + $0x8] sm:$0xff]  ;;  %v105_v40 = vld [vmem:[#allocation2 + $0x10] sm:$0xff] }
  0x6e   :  { %1458 = vmatpush3.bf16.msra.mxu0 %v103_v32  ;;  %v106_v45 = vld [vmem:[#allocation2 + $0x18] sm:$0xff]  ;;  %v107_v50 = vld [vmem:[#allocation2 + $0x20] sm:$0xff]  ;;  %v108_v55 = vld [vmem:[#allocation2 + $0x28] sm:$0xff]  ;;  %v1869_v9 = vshrl.u32 %v202_v6, 7 }
  0x6f   :  { %v164_v30 = vadd.f32 %v163_v28, %v157_v26  ;;  %v170_v31 = vadd.f32 %v169_v29, %v158_v27  ;;  %1459 = vmatprep.subr.bf16.mxu0 %v1708_v25  ;;  %v109_v60 = vld [vmem:[#allocation2 + $0x30] sm:$0xff]  ;;  %v110_v2 = vld [vmem:[#allocation2 + $0x38] sm:$0xff]  ;;  %v1262_v11 = vld [vmem:[%s2248_s4 + $0x2] ss:$2 sm:$0x3] }
  0x70   :  { %v1872_v10 = vsub.s32 0, %v1869_v9  ;;  %v1878_v12 = vsub.s32 1, %v1869_v9  ;;  %v1263_v13 = vld [vmem:[%s2248_s4 + $0x3] ss:$2 sm:$0x3] }
  0x71   :  { %v165_v33 = vrot.slane %v164_v30, 2  ;;  %v171_v34 = vrot.slane %v170_v31, 2 }
  0x72   :  { %1460 = vmatpush3.bf16.msra.mxu0 %v104_v35  ;;  %v205_v14 = vrot.slane %v1262_v11, %v1872_v10  ;;  %v209_v16 = vrot.slane %v1262_v11, %v1878_v12  ;;  %v218_v19 = vrot.slane %v1263_v13, %v1872_v10  ;;  %v222_v21 = vrot.slane %v1263_v13, %v1878_v12 }
  0x73   :  { %v166_v36 = vadd.f32 %v165_v33, %v164_v30  ;;  %v172_v37 = vadd.f32 %v171_v34, %v170_v31  ;;  %1461 = vmatprep.subr.bf16.mxu0 %v1708_v25 }
  0x75   :  { %v167_v38 = vrot.slane %v166_v36, 1  ;;  %v173_v39 = vrot.slane %v172_v37, 1 }
  0x76   :  { %1462 = vmatpush3.bf16.msra.mxu0 %v105_v40 }
  0x77   :  { %v168_v41 = vadd.f32 %v167_v38, %v166_v36  ;;  %v174_v42 = vadd.f32 %v173_v39, %v172_v37  ;;  %1463 = vmatprep.subr.bf16.mxu0 %v1708_v25 }
  0x79   :  { %v175_v43 = vmul.f32 0.125, %v168_v41  ;;  %v176_v44 = vmul.f32 0.125, %v174_v42 }
  0x7a   :  { %1464 = vmatpush3.bf16.msra.mxu0 %v106_v45 }
  0x7b   :  { %v177_v46 = vsub.f32 %v157_v26, %v175_v43  ;;  %v178_v47 = vsub.f32 %v158_v27, %v176_v44  ;;  %1465 = vmatprep.subr.bf16.mxu0 %v1708_v25 }
  0x7d   :  { %v179_v48 = vmul.f32 %v177_v46, %v177_v46  ;;  %v180_v49 = vmul.f32 %v178_v47, %v178_v47 }
  0x7e   :  { %1466 = vmatpush3.bf16.msra.mxu0 %v107_v50 }
  0x7f   :  { %v181_v51 = vrot.slane %v179_v48, 4  ;;  %v187_v52 = vrot.slane %v180_v49, 4  ;;  %1467 = vmatprep.subr.bf16.mxu0 %v1708_v25 }
  0x81   :  { %v182_v53 = vadd.f32 %v181_v51, %v179_v48  ;;  %v188_v54 = vadd.f32 %v187_v52, %v180_v49 }
  0x82   :  { %1468 = vmatpush3.bf16.msra.mxu0 %v108_v55 }
  0x83   :  { %v183_v56 = vrot.slane %v182_v53, 2  ;;  %v189_v57 = vrot.slane %v188_v54, 2  ;;  %1469 = vmatprep.subr.bf16.mxu0 %v1708_v25 }
  0x85   :  { %v184_v58 = vadd.f32 %v183_v56, %v182_v53  ;;  %v190_v59 = vadd.f32 %v189_v57, %v188_v54 }
  0x86   :  { %1470 = vmatpush3.bf16.msra.mxu0 %v109_v60 }
  0x87   :  { %v185_v61 = vrot.slane %v184_v58, 1  ;;  %v191_v62 = vrot.slane %v190_v59, 1  ;;  %1471 = vmatprep.subr.bf16.mxu0 %v1708_v25 }
  0x89   :  { %v186_v63 = vadd.f32 %v185_v61, %v184_v58  ;;  %v192_v1 = vadd.f32 %v191_v62, %v190_v59 }
  0x8a   :  { %1472 = vmatpush3.bf16.msra.mxu0 %v110_v2 }
  0x8b   :  { %v193_v3 = vmul.f32 0.125, %v186_v63  ;;  %v194_v4 = vmul.f32 0.125, %v192_v1 }
  0x8d   :  { %v195_v7 = vadd.f32 1e-05, %v193_v3  ;;  %v196_v8 = vadd.f32 1e-05, %v194_v4  ;;  %1474 = vmatmul.mubr.bf16.vlgmr.msra.gmra.mrb[0].mxu0 %v111_v5 }
  0x8f   :  { %1544 = vrsqrt.f32 %v195_v7 }
  0x90   :  { %1546 = vrsqrt.f32 %v196_v8 }
  0x99   :  { %v1545_v15 = vpop.eup %1544 }
  0x9a   :  { %v1547_v17 = vpop.eup %1546  ;;  %v199_v18 = vmul.f32 %v1545_v15, %v177_v46 }
  0x9b   :  { %v200_v20 = vmul.f32 %v1547_v17, %v178_v47 }
  0x9c   :  { %v212_v22 = vmul.f32 %v205_v14, %v199_v18 }
  0x9d   :  { %v213_v23 = vmul.f32 %v209_v16, %v200_v20 }
  0x9e   :  { %v1887_v24 = vadd.f32 %v218_v19, %v212_v22 }
  0x9f   :  { %v226_v26 = vadd.f32 %v222_v21, %v213_v23 }
 0x160   :  { %v146_v27 = vpop.f32.mrb[0].mxu0 }
 0x161   :  { %v1890_v28 = vadd.f32 %v1813_v0, %v146_v27  ;;  %v1475_v29 = vpop.f32.mrb[1].mxu0 }
 0x162   :  { %v149_v30 = vpop.f32.mrb[2].mxu0 }
 0x163   :  { %v1476_v31 = vpop.f32.mrb[3].mxu0 }
 0x164   :  { %1699 = dma.done.wait [#allocation3 + $0x1], 2048 }
 0x165   :  { %1700 = vsyncadd [#allocation3 + $0x1], 4294965248  ;;  %v260_v32 = vpack.c.bf16 %v226_v26, %v226_v26  ;;  %s1895_s15 = scalar_lea.hbm %s2249_s5, 9216  ;;  %p1648_p3 = scmp.lt.u32.totalorder %s1831_s0, %s2249_s5 }
 0x166   :  { %p1646_p10 = scmp.ne.s32.totalorder %s1831_s0, %s1895_s15  ;;  %p1649_p4 = scmp.lt.u32.totalorder %s1782_s25, %s1895_s15 }
 0x167   :  { %p1651_p6 = scmp.lt.u32.totalorder %s1895_s15, %s1831_s0 }
 0x168   :  { %p1650_p5 = por %p1649_p4, %p1648_p3 }
 0x16a   :  { %p1652_p7 = por %p1651_p6, %p1650_p5 }
 0x16c   :  { %p1653_p8 = pnand %p1652_p7, %p1646_p10 }
 0x16e   :  { %1656 = shalt.err (!%p1653_p8)  }
 0x16f   :  { %s1657_s19 = scalar_lea.vmem %s1768_s18, 6144 }
 0x170   :  { %p1658_p9 = scmp.ne.s32.totalorder %s1768_s18, %s1657_s19  ;;  %p1663_p11 = scmp.lt.s32.totalorder %s1798_s9, %s1657_s19 }
 0x172   :  { %p1664_p13 = por %p1663_p11, %p1613_p0 }
 0x174   :  { %p1665_p1 = pnand %p1664_p13, %p1658_p9 }
 0x176   :  { %1668 = shalt.err (!%p1665_p1)  }
 0x177   :  { %242 = dma.hbm_to_vmem [thread:$0]  %s1831_s0, 6144, %s1768_s18, [#allocation3]  ;;  %293 = vmatprep.mubr.bf16.mxu1 %v260_v32  ;;  %v302_v0 = vld [vmem:[%s2246_s2] sm:$0xff]  ;;  %v303_v33 = vld [vmem:[%s2246_s2 + $0x8] sm:$0xff]  ;;  %v304_v34 = vld [vmem:[%s2246_s2 + $0x10] sm:$0xff] }
 0x178   :  { %v1930_v35 = vld [vmem:[%s2246_s2 + $0x18] sm:$0xff]  ;;  %v1935_v36 = vld [vmem:[%s2246_s2 + $0x20] sm:$0xff]  ;;  %v1940_v37 = vld [vmem:[%s2246_s2 + $0x28] sm:$0xff]  ;;  %v312_v38 = vrot.slane %v302_v0, 4  ;;  %v318_v39 = vrot.slane %v303_v33, 4  ;;  %v324_v40 = vrot.slane %v304_v34, 4 }
 0x179   :  { %v330_v44 = vrot.slane %v1930_v35, 4  ;;  %v251_v45 = vld [vmem:[#allocation2 + $0x1c0] sm:$0xff]  ;;  %v252_v47 = vld [vmem:[#allocation2 + $0x1c8] sm:$0xff]  ;;  %v336_v48 = vrot.slane %v1935_v36, 4  ;;  %v342_v49 = vrot.slane %v1940_v37, 4  ;;  %v253_v61 = vld [vmem:[#allocation2 + $0x1d0] sm:$0xff] }
 0x17a   :  { %v313_v41 = vadd.f32 %v312_v38, %v302_v0  ;;  %v319_v42 = vadd.f32 %v318_v39, %v303_v33  ;;  %v325_v43 = vadd.f32 %v324_v40, %v304_v34  ;;  %v243_v46 = vld [vmem:[#allocation2 + $0x180] sm:$0xff]  ;;  %1286 = vmatprep.subr.bf16.mxu1 %v251_v45  ;;  %v244_v56 = vld [vmem:[#allocation2 + $0x188] sm:$0xff]  ;;  %v245_v7 = vld [vmem:[#allocation2 + $0x190] sm:$0xff] }
 0x17b   :  { %v331_v53 = vadd.f32 %v330_v44, %v1930_v35  ;;  %1287 = vmatpush3.bf16.msra.mxu1 %v243_v46  ;;  %v337_v54 = vadd.f32 %v336_v48, %v1935_v36  ;;  %v343_v55 = vadd.f32 %v342_v49, %v1940_v37  ;;  %v254_v15 = vld [vmem:[#allocation2 + $0x1d8] sm:$0xff]  ;;  %v255_v32 = vld [vmem:[#allocation2 + $0x1e0] sm:$0xff] }
 0x17c   :  { %v314_v50 = vrot.slane %v313_v41, 2  ;;  %v320_v51 = vrot.slane %v319_v42, 2  ;;  %v326_v52 = vrot.slane %v325_v43, 2  ;;  %1288 = vmatprep.subr.bf16.mxu1 %v252_v47  ;;  %v246_v26 = vld [vmem:[#allocation2 + $0x198] sm:$0xff]  ;;  %v256_v47 = vld [vmem:[#allocation2 + $0x1e8] sm:$0xff] }
 0x17d   :  { %v332_v60 = vrot.slane %v331_v53, 2  ;;  %v338_v62 = vrot.slane %v337_v54, 2  ;;  %v344_v63 = vrot.slane %v343_v55, 2 }
 0x17e   :  { %v315_v57 = vadd.f32 %v314_v50, %v313_v41  ;;  %v321_v58 = vadd.f32 %v320_v51, %v319_v42  ;;  %v327_v59 = vadd.f32 %v326_v52, %v325_v43  ;;  %v247_v43 = vld [vmem:[#allocation2 + $0x1a0] sm:$0xff] }
 0x17f   :  { %v333_v4 = vadd.f32 %v332_v60, %v331_v53  ;;  %1289 = vmatpush3.bf16.msra.mxu1 %v244_v56  ;;  %v339_v5 = vadd.f32 %v338_v62, %v337_v54  ;;  %v345_v6 = vadd.f32 %v344_v63, %v343_v55  ;;  %v248_v54 = vld [vmem:[#allocation2 + $0x1a8] sm:$0xff] }
 0x180   :  { %v316_v1 = vrot.slane %v315_v57, 1  ;;  %v322_v2 = vrot.slane %v321_v58, 1  ;;  %v328_v3 = vrot.slane %v327_v59, 1  ;;  %1290 = vmatprep.subr.bf16.mxu1 %v253_v61 }
 0x181   :  { %v334_v14 = vrot.slane %v333_v4, 1  ;;  %v340_v16 = vrot.slane %v339_v5, 1  ;;  %v346_v17 = vrot.slane %v345_v6, 1 }
 0x182   :  { %v317_v8 = vadd.f32 %v316_v1, %v315_v57  ;;  %v323_v11 = vadd.f32 %v322_v2, %v321_v58  ;;  %v329_v13 = vadd.f32 %v328_v3, %v327_v59  ;;  %v257_v59 = vld [vmem:[#allocation2 + $0x1f0] sm:$0xff] }
 0x183   :  { %v335_v18 = vadd.f32 %v334_v14, %v333_v4  ;;  %1291 = vmatpush3.bf16.msra.mxu1 %v245_v7  ;;  %v341_v22 = vadd.f32 %v340_v16, %v339_v5  ;;  %v347_v23 = vadd.f32 %v346_v17, %v345_v6  ;;  %v249_v5 = vld [vmem:[#allocation2 + $0x1b0] sm:$0xff] }
 0x184   :  { %v348_v19 = vmul.f32 0.125, %v317_v8  ;;  %v349_v20 = vmul.f32 0.125, %v323_v11  ;;  %v350_v21 = vmul.f32 0.125, %v329_v13  ;;  %1292 = vmatprep.subr.bf16.mxu1 %v254_v15  ;;  %v258_v13 = vld [vmem:[#allocation2 + $0x1f8] sm:$0xff] }
 0x185   :  { %v351_v27 = vmul.f32 0.125, %v335_v18  ;;  %v352_v38 = vmul.f32 0.125, %v341_v22  ;;  %v353_v39 = vmul.f32 0.125, %v347_v23  ;;  %v250_v22 = vld [vmem:[#allocation2 + $0x1b8] sm:$0xff] }
 0x186   :  { %v1948_v29 = vsub.f32 %v302_v0, %v348_v19  ;;  %v1950_v30 = vsub.f32 %v303_v33, %v349_v20  ;;  %v1952_v31 = vsub.f32 %v304_v34, %v350_v21 }
 0x187   :  { %v1955_v40 = vsub.f32 %v1930_v35, %v351_v27  ;;  %1293 = vmatpush3.bf16.msra.mxu1 %v246_v26  ;;  %v1964_v33 = vsub.f32 %v1935_v36, %v352_v38  ;;  %v1967_v34 = vsub.f32 %v1940_v37, %v353_v39 }
 0x188   :  { %v360_v41 = vmul.f32 %v1948_v29, %v1948_v29  ;;  %v361_v42 = vmul.f32 %v1950_v30, %v1950_v30  ;;  %v362_v0 = vmul.f32 %v1952_v31, %v1952_v31  ;;  %1294 = vmatprep.subr.bf16.mxu1 %v255_v32 }
 0x189   :  { %v363_v35 = vmul.f32 %v1955_v40, %v1955_v40  ;;  %v364_v48 = vmul.f32 %v1964_v33, %v1964_v33  ;;  %v365_v49 = vmul.f32 %v1967_v34, %v1967_v34 }
 0x18a   :  { %v366_v44 = vrot.slane %v360_v41, 4  ;;  %v372_v45 = vrot.slane %v361_v42, 4  ;;  %v378_v46 = vrot.slane %v362_v0, 4 }
 0x18b   :  { %v384_v37 = vrot.slane %v363_v35, 4  ;;  %1295 = vmatpush3.bf16.msra.mxu1 %v247_v43  ;;  %v390_v52 = vrot.slane %v364_v48, 4  ;;  %v396_v53 = vrot.slane %v365_v49, 4 }
 0x18c   :  { %v367_v36 = vadd.f32 %v366_v44, %v360_v41  ;;  %v373_v50 = vadd.f32 %v372_v45, %v361_v42  ;;  %v379_v51 = vadd.f32 %v378_v46, %v362_v0  ;;  %1296 = vmatprep.subr.bf16.mxu1 %v256_v47  ;;  %v259_v41 = vpack.c.bf16 %v1887_v24, %v1887_v24  ;;  %v1264_v24 = vld [vmem:[%s2248_s4 + $0x6] ss:$2 sm:$0x3f] }
 0x18d   :  { %v385_v58 = vadd.f32 %v384_v37, %v363_v35  ;;  %v391_v60 = vadd.f32 %v390_v52, %v364_v48  ;;  %v397_v61 = vadd.f32 %v396_v53, %v365_v49  ;;  %v1981_v49 = vsub.s32 2, %v1869_v9 }
 0x18e   :  { %v368_v55 = vrot.slane %v367_v36, 2  ;;  %v374_v56 = vrot.slane %v373_v50, 2  ;;  %v380_v57 = vrot.slane %v379_v51, 2  ;;  %v1991_v37 = vsub.s32 4, %v1869_v9 }
 0x18f   :  { %v386_v2 = vrot.slane %v385_v58, 2  ;;  %1297 = vmatpush3.bf16.msra.mxu1 %v248_v54  ;;  %v392_v3 = vrot.slane %v391_v60, 2  ;;  %v398_v4 = vrot.slane %v397_v61, 2  ;;  %v434_v53 = vrot.slane %v1264_v24, %v1878_v12 }
 0x190   :  { %v369_v62 = vadd.f32 %v368_v55, %v367_v36  ;;  %v375_v63 = vadd.f32 %v374_v56, %v373_v50  ;;  %v381_v1 = vadd.f32 %v380_v57, %v379_v51  ;;  %1298 = vmatprep.subr.bf16.mxu1 %v257_v59  ;;  %v1265_v36 = vld [vmem:[%s2248_s4 + $0x7] ss:$2 sm:$0x3f]  ;;  %v1987_v50 = vsub.s32 3, %v1869_v9 }
 0x191   :  { %v387_v11 = vadd.f32 %v386_v2, %v385_v58  ;;  %v393_v14 = vadd.f32 %v392_v3, %v391_v60  ;;  %v399_v15 = vadd.f32 %v398_v4, %v397_v61  ;;  %v430_v51 = vrot.slane %v1264_v24, %v1872_v10 }
 0x192   :  { %v370_v6 = vrot.slane %v369_v62, 1  ;;  %v376_v7 = vrot.slane %v375_v63, 1  ;;  %v382_v8 = vrot.slane %v381_v1, 1  ;;  %v1995_v54 = vsub.s32 5, %v1869_v9 }
 0x193   :  { %v388_v19 = vrot.slane %v387_v11, 1  ;;  %1299 = vmatpush3.bf16.msra.mxu1 %v249_v5  ;;  %v394_v20 = vrot.slane %v393_v14, 1  ;;  %v400_v21 = vrot.slane %v399_v15, 1  ;;  %v438_v57 = vrot.slane %v1264_v24, %v1981_v49 }
 0x194   :  { %v371_v16 = vadd.f32 %v370_v6, %v369_v62  ;;  %v377_v17 = vadd.f32 %v376_v7, %v375_v63  ;;  %v383_v18 = vadd.f32 %v382_v8, %v381_v1  ;;  %1300 = vmatprep.subr.bf16.mxu1 %v258_v13  ;;  %v467_v58 = vrot.slane %v1265_v36, %v1872_v10 }
 0x195   :  { %v389_v23 = vadd.f32 %v388_v19, %v387_v11  ;;  %v395_v38 = vadd.f32 %v394_v20, %v393_v14  ;;  %v401_v39 = vadd.f32 %v400_v21, %v399_v15  ;;  %v442_v61 = vrot.slane %v1264_v24, %v1987_v50 }
 0x196   :  { %v402_v26 = vmul.f32 0.125, %v371_v16  ;;  %v403_v27 = vmul.f32 0.125, %v377_v17  ;;  %v404_v32 = vmul.f32 0.125, %v383_v18  ;;  %v471_v62 = vrot.slane %v1265_v36, %v1878_v12 }
 0x197   :  { %v405_v42 = vmul.f32 0.125, %v389_v23  ;;  %1301 = vmatpush3.bf16.msra.mxu1 %v250_v22  ;;  %v406_v35 = vmul.f32 0.125, %v395_v38  ;;  %v407_v44 = vmul.f32 0.125, %v401_v39  ;;  %v446_v9 = vrot.slane %v1264_v24, %v1991_v37 }
 0x198   :  { %v408_v0 = vadd.f32 1e-05, %v402_v26  ;;  %v409_v43 = vadd.f32 1e-05, %v403_v27  ;;  %v410_v45 = vadd.f32 1e-05, %v404_v32  ;;  %v475_v3 = vrot.slane %v1265_v36, %v1981_v49 }
 0x199   :  { %v411_v46 = vadd.f32 1e-05, %v405_v42  ;;  %v412_v47 = vadd.f32 1e-05, %v406_v35  ;;  %v413_v48 = vadd.f32 1e-05, %v407_v44  ;;  %v450_v5 = vrot.slane %v1264_v24, %v1995_v54 }
 0x19a   :  { %1548 = vrsqrt.f32 %v408_v0  ;;  %294 = vmatmul.mubr.bf16.vlgmr.msra.gmra.mrb[0].mxu1 %v259_v41  ;;  %v483_v13 = vrot.slane %v1265_v36, %v1991_v37  ;;  %v487_v16 = vrot.slane %v1265_v36, %v1995_v54 }
 0x19b   :  { %1550 = vrsqrt.f32 %v409_v43 }
 0x19c   :  { %1552 = vrsqrt.f32 %v410_v45 }
 0x19d   :  { %1554 = vrsqrt.f32 %v411_v46 }
 0x19e   :  { %1556 = vrsqrt.f32 %v412_v47 }
 0x19f   :  { %1558 = vrsqrt.f32 %v413_v48 }
 0x1a4   :  { %v1549_v52 = vpop.eup %1548 }
 0x1a5   :  { %v1551_v55 = vpop.eup %1550  ;;  %v420_v56 = vmul.f32 %v1549_v52, %v1948_v29 }
 0x1a6   :  { %v1553_v59 = vpop.eup %1552  ;;  %v421_v60 = vmul.f32 %v1551_v55, %v1950_v30  ;;  %v479_v30 = vrot.slane %v1265_v36, %v1987_v50 }
 0x1a7   :  { %v1555_v63 = vpop.eup %1554  ;;  %v422_v1 = vmul.f32 %v1553_v59, %v1952_v31  ;;  %v457_v2 = vmul.f32 %v430_v51, %v420_v56 }
 0x1a8   :  { %v1557_v29 = vpop.eup %1556  ;;  %v423_v4 = vmul.f32 %v1555_v63, %v1955_v40  ;;  %v458_v6 = vmul.f32 %v434_v53, %v421_v60 }
 0x1a9   :  { %v1559_v7 = vpop.eup %1558  ;;  %v424_v8 = vmul.f32 %v1557_v29, %v1964_v33  ;;  %v459_v11 = vmul.f32 %v438_v57, %v422_v1  ;;  %v2011_v31 = vadd.f32 %v467_v58, %v457_v2 }
 0x1aa   :  { %v425_v14 = vmul.f32 %v1559_v7, %v1967_v34  ;;  %v460_v15 = vmul.f32 %v442_v61, %v423_v4  ;;  %v495_v17 = vadd.f32 %v471_v62, %v458_v6 }
 0x1ab   :  { %v461_v40 = vmul.f32 %v446_v9, %v424_v8  ;;  %v2015_v18 = vadd.f32 %v475_v3, %v459_v11 }
 0x1ac   :  { %v462_v19 = vmul.f32 %v450_v5, %v425_v14  ;;  %v497_v20 = vadd.f32 %v479_v30, %v460_v15 }
 0x1ad   :  { %v2017_v21 = vadd.f32 %v483_v13, %v461_v40 }
 0x1ae   :  { %v2019_v22 = vadd.f32 %v487_v16, %v462_v19 }
 0x26d   :  { %v1302_v33 = vpop.f32.mrb[0].mxu1 }
 0x26e   :  { %v1303_v23 = vpop.f32.mrb[1].mxu1 }
 0x26f   :  { %v1304_v26 = vadd.f32 %v1303_v23, %v1302_v33  ;;  %v1305_v27 = vpop.f32.mrb[2].mxu1 }
 0x270   :  { %v1306_v32 = vpop.f32.mrb[3].mxu1 }
 0x271   :  { %v2022_v34 = vadd.f32 %v1304_v26, %v1890_v28 }
 0x272   :  { %1701 = dma.done.wait [#allocation3], 6144 }
 0x273   :  { %1702 = vsyncadd [#allocation3], 4294961152  ;;  %v565_v38 = vpack.c.bf16 %v495_v17, %v495_v17  ;;  %v567_v39 = vpack.c.bf16 %v497_v20, %v497_v20  ;;  %p1671_p0 = scmp.ne.s32.totalorder %s1895_s15, %s1782_s25  ;;  %p1673_p2 = scmp.lt.u32.totalorder %s1895_s15, %s2249_s5 }
 0x274   :  { %p1674_p10 = scmp.lt.u32.totalorder %s1782_s25, %s1782_s25 }
 0x276   :  { %p1675_p3 = por %p1674_p10, %p1673_p2 }
 0x278   :  { %p1677_p5 = por %p1675_p3, %p1649_p4 }
 0x27a   :  { %p1678_p6 = pnand %p1677_p5, %p1671_p0 }
 0x27c   :  { %1681 = shalt.err (!%p1678_p6)  }
 0x27d   :  { %s1682_s17 = scalar_lea.vmem %s1826_s20, 6144 }
 0x27e   :  { %p1683_p7 = scmp.ne.s32.totalorder %s1826_s20, %s1682_s17  ;;  %p1688_p8 = scmp.lt.s32.totalorder %s1798_s9, %s1682_s17 }
 0x280   :  { %p1689_p9 = por %p1688_p8, %p1637_p12 }
 0x282   :  { %p1690_p11 = pnand %p1689_p9, %p1683_p7 }
 0x284   :  { %1693 = shalt.err (!%p1690_p11)  }
 0x285   :  { %515 = dma.hbm_to_vmem [thread:$0]  %s1895_s15, 6144, %s1826_s20, [#allocation3 + $0x1]  ;;  %602 = vmatprep.mubr.bf16.mxu0 %v565_v38  ;;  %642 = vmatprep.mubr.bf16.mxu1 %v567_v39  ;;  %v2046_v28 = vld [vmem:[%s2247_s3] sm:$0xff]  ;;  %v2051_v41 = vld [vmem:[%s2247_s3 + $0x8] sm:$0xff]  ;;  %v2056_v42 = vld [vmem:[%s2247_s3 + $0x10] sm:$0xff] }
 0x286   :  { %v2061_v0 = vld [vmem:[%s2247_s3 + $0x18] sm:$0xff]  ;;  %v2066_v43 = vld [vmem:[%s2247_s3 + $0x20] sm:$0xff]  ;;  %v2071_v35 = vld [vmem:[%s2247_s3 + $0x28] sm:$0xff]  ;;  %v701_v44 = vrot.slane %v2046_v28, 4  ;;  %v707_v45 = vrot.slane %v2051_v41, 4  ;;  %v713_v46 = vrot.slane %v2056_v42, 4 }
 0x287   :  { %v719_v36 = vrot.slane %v2061_v0, 4  ;;  %v524_v51 = vld [vmem:[#allocation2 + $0x40] sm:$0xff]  ;;  %v725_v55 = vrot.slane %v2066_v43, 4  ;;  %v731_v56 = vrot.slane %v2071_v35, 4  ;;  %v525_v58 = vld [vmem:[#allocation2 + $0x48] sm:$0xff]  ;;  %v526_v30 = vld [vmem:[#allocation2 + $0x50] sm:$0xff] }
 0x288   :  { %v702_v47 = vadd.f32 %v701_v44, %v2046_v28  ;;  %v708_v48 = vadd.f32 %v707_v45, %v2051_v41  ;;  %v714_v24 = vadd.f32 %v713_v46, %v2056_v42  ;;  %v540_v52 = vld [vmem:[#allocation2 + $0xc0] sm:$0xff]  ;;  %1308 = vmatprep.subr.bf16.mxu0 %v524_v51  ;;  %v541_v59 = vld [vmem:[#allocation2 + $0xc8] sm:$0xff]  ;;  %v542_v11 = vld [vmem:[#allocation2 + $0xd0] sm:$0xff] }
 0x289   :  { %v516_v53 = vld [vmem:[#allocation2] sm:$0xff]  ;;  %1330 = vmatprep.subr.bf16.mxu1 %v540_v52  ;;  %v720_v63 = vadd.f32 %v719_v36, %v2061_v0  ;;  %v726_v1 = vadd.f32 %v725_v55, %v2066_v43  ;;  %v732_v9 = vadd.f32 %v731_v56, %v2071_v35  ;;  %v517_v2 = vld [vmem:[#allocation2 + $0x8] sm:$0xff]  ;;  %v518_v19 = vld [vmem:[#allocation2 + $0x10] sm:$0xff] }
 0x28a   :  { %v532_v57 = vld [vmem:[#allocation2 + $0x80] sm:$0xff]  ;;  %v703_v60 = vrot.slane %v702_v47, 2  ;;  %v709_v61 = vrot.slane %v708_v48, 2  ;;  %v715_v62 = vrot.slane %v714_v24, 2  ;;  %1309 = vmatpush3.bf16.msra.mxu0 %v516_v53  ;;  %v533_v3 = vld [vmem:[#allocation2 + $0x88] sm:$0xff]  ;;  %v534_v20 = vld [vmem:[#allocation2 + $0x90] sm:$0xff] }
 0x28b   :  { %1331 = vmatpush3.bf16.msra.mxu1 %v532_v57  ;;  %1310 = vmatprep.subr.bf16.mxu0 %v525_v58  ;;  %v721_v6 = vrot.slane %v720_v63, 2  ;;  %v727_v7 = vrot.slane %v726_v1, 2  ;;  %v733_v8 = vrot.slane %v732_v9, 2  ;;  %v527_v32 = vld [vmem:[#allocation2 + $0x58] sm:$0xff]  ;;  %v528_v58 = vld [vmem:[#allocation2 + $0x60] sm:$0xff] }
 0x28c   :  { %v704_v29 = vadd.f32 %v703_v60, %v702_v47  ;;  %v710_v4 = vadd.f32 %v709_v61, %v708_v48  ;;  %v716_v5 = vadd.f32 %v715_v62, %v714_v24  ;;  %1332 = vmatprep.subr.bf16.mxu1 %v541_v59  ;;  %v543_v44 = vld [vmem:[#allocation2 + $0xd8] sm:$0xff]  ;;  %v544_v61 = vld [vmem:[#allocation2 + $0xe0] sm:$0xff] }
 0x28d   :  { %v722_v16 = vadd.f32 %v721_v6, %v720_v63  ;;  %v728_v17 = vadd.f32 %v727_v7, %v726_v1  ;;  %v734_v40 = vadd.f32 %v733_v8, %v732_v9  ;;  %v519_v51 = vld [vmem:[#allocation2 + $0x18] sm:$0xff] }
 0x28e   :  { %v705_v13 = vrot.slane %v704_v29, 1  ;;  %v711_v14 = vrot.slane %v710_v4, 1  ;;  %v717_v15 = vrot.slane %v716_v5, 1  ;;  %1311 = vmatpush3.bf16.msra.mxu0 %v517_v2  ;;  %v535_v57 = vld [vmem:[#allocation2 + $0x98] sm:$0xff] }
 0x28f   :  { %1333 = vmatpush3.bf16.msra.mxu1 %v533_v3  ;;  %1312 = vmatprep.subr.bf16.mxu0 %v526_v30  ;;  %v723_v27 = vrot.slane %v722_v16, 1  ;;  %v729_v38 = vrot.slane %v728_v17, 1  ;;  %v735_v39 = vrot.slane %v734_v40, 1 }
 0x290   :  { %v706_v33 = vadd.f32 %v705_v13, %v704_v29  ;;  %v712_v23 = vadd.f32 %v711_v14, %v710_v4  ;;  %v718_v26 = vadd.f32 %v717_v15, %v716_v5  ;;  %1334 = vmatprep.subr.bf16.mxu1 %v542_v11  ;;  %v536_v4 = vld [vmem:[#allocation2 + $0xa0] sm:$0xff]  ;;  %v529_v5 = vld [vmem:[#allocation2 + $0x68] sm:$0xff] }
 0x291   :  { %v724_v45 = vadd.f32 %v723_v27, %v722_v16  ;;  %v730_v24 = vadd.f32 %v729_v38, %v728_v17  ;;  %v736_v36 = vadd.f32 %v735_v39, %v734_v40  ;;  %v521_v15 = vld [vmem:[#allocation2 + $0x28] sm:$0xff]  ;;  %v546_v27 = vld [vmem:[#allocation2 + $0xf0] sm:$0xff] }
 0x292   :  { %v737_v46 = vmul.f32 0.125, %v706_v33  ;;  %v738_v47 = vmul.f32 0.125, %v712_v23  ;;  %v739_v48 = vmul.f32 0.125, %v718_v26  ;;  %1313 = vmatpush3.bf16.msra.mxu0 %v518_v19  ;;  %v530_v33 = vld [vmem:[#allocation2 + $0x70] sm:$0xff] }
 0x293   :  { %1335 = vmatpush3.bf16.msra.mxu1 %v534_v20  ;;  %1314 = vmatprep.subr.bf16.mxu0 %v527_v32  ;;  %v740_v52 = vmul.f32 0.125, %v724_v45  ;;  %v741_v59 = vmul.f32 0.125, %v730_v24  ;;  %v742_v60 = vmul.f32 0.125, %v736_v36  ;;  %v537_v20 = vld [vmem:[#allocation2 + $0xa8] sm:$0xff] }
 0x294   :  { %v2086_v53 = vsub.f32 %v2046_v28, %v737_v46  ;;  %v2089_v55 = vsub.f32 %v2051_v41, %v738_v47  ;;  %v2092_v56 = vsub.f32 %v2056_v42, %v739_v48  ;;  %1336 = vmatprep.subr.bf16.mxu1 %v543_v44  ;;  %v522_v47 = vld [vmem:[#allocation2 + $0x30] sm:$0xff] }
 0x295   :  { %v2095_v62 = vsub.f32 %v2061_v0, %v740_v52  ;;  %v2104_v42 = vsub.f32 %v2066_v43, %v741_v59  ;;  %v2107_v1 = vsub.f32 %v2071_v35, %v742_v60  ;;  %v520_v0 = vld [vmem:[#allocation2 + $0x20] sm:$0xff]  ;;  %v545_v35 = vld [vmem:[#allocation2 + $0xe8] sm:$0xff]  ;;  %v538_v52 = vld [vmem:[#allocation2 + $0xb0] sm:$0xff] }
 0x296   :  { %v749_v63 = vmul.f32 %v2086_v53, %v2086_v53  ;;  %v750_v28 = vmul.f32 %v2089_v55, %v2089_v55  ;;  %v751_v41 = vmul.f32 %v2092_v56, %v2092_v56  ;;  %1315 = vmatpush3.bf16.msra.mxu0 %v519_v51  ;;  %v547_v60 = vld [vmem:[#allocation2 + $0xf8] sm:$0xff] }
 0x297   :  { %1337 = vmatpush3.bf16.msra.mxu1 %v535_v57  ;;  %1316 = vmatprep.subr.bf16.mxu0 %v528_v58  ;;  %v752_v9 = vmul.f32 %v2095_v62, %v2095_v62  ;;  %v753_v6 = vmul.f32 %v2104_v42, %v2104_v42  ;;  %v754_v43 = vmul.f32 %v2107_v1, %v2107_v1  ;;  %v531_v57 = vld [vmem:[#allocation2 + $0x78] sm:$0xff] }
 0x298   :  { %v755_v2 = vrot.slane %v749_v63, 4  ;;  %v761_v3 = vrot.slane %v750_v28, 4  ;;  %v767_v29 = vrot.slane %v751_v41, 4  ;;  %1338 = vmatprep.subr.bf16.mxu1 %v544_v61 }
 0x299   :  { %v773_v11 = vrot.slane %v752_v9, 4  ;;  %v779_v13 = vrot.slane %v753_v6, 4  ;;  %v785_v14 = vrot.slane %v754_v43, 4 }
 0x29a   :  { %v756_v30 = vadd.f32 %v755_v2, %v749_v63  ;;  %v762_v7 = vadd.f32 %v761_v3, %v750_v28  ;;  %v768_v8 = vadd.f32 %v767_v29, %v751_v41  ;;  %1317 = vmatpush3.bf16.msra.mxu0 %v520_v0  ;;  %v523_v2 = vld [vmem:[#allocation2 + $0x38] sm:$0xff] }
 0x29b   :  { %1339 = vmatpush3.bf16.msra.mxu1 %v536_v4  ;;  %1318 = vmatprep.subr.bf16.mxu0 %v529_v5  ;;  %v774_v19 = vadd.f32 %v773_v11, %v752_v9  ;;  %v780_v23 = vadd.f32 %v779_v13, %v753_v6  ;;  %v786_v26 = vadd.f32 %v785_v14, %v754_v43  ;;  %v539_v6 = vld [vmem:[#allocation2 + $0xb8] sm:$0xff]  ;;  %v556_v43 = vld [vmem:[#allocation2 + $0x140] sm:$0xff] }
 0x29c   :  { %v757_v16 = vrot.slane %v756_v30, 2  ;;  %v763_v17 = vrot.slane %v762_v7, 2  ;;  %v769_v40 = vrot.slane %v768_v8, 2  ;;  %1340 = vmatprep.subr.bf16.mxu1 %v545_v35  ;;  %v566_v14 = vpack.c.bf16 %v2015_v18, %v2015_v18  ;;  %v549_v18 = vld [vmem:[#allocation2 + $0x108] sm:$0xff] }
 0x29d   :  { %v775_v44 = vrot.slane %v774_v19, 2  ;;  %v781_v45 = vrot.slane %v780_v23, 2  ;;  %v787_v46 = vrot.slane %v786_v26, 2 }
 0x29e   :  { %v758_v32 = vadd.f32 %v757_v16, %v756_v30  ;;  %v764_v38 = vadd.f32 %v763_v17, %v762_v7  ;;  %v770_v39 = vadd.f32 %v769_v40, %v768_v8  ;;  %1319 = vmatpush3.bf16.msra.mxu0 %v521_v15  ;;  %v564_v7 = vpack.c.bf16 %v2011_v31, %v2011_v31  ;;  %v548_v40 = vld [vmem:[#allocation2 + $0x100] sm:$0xff] }
 0x29f   :  { %1341 = vmatpush3.bf16.msra.mxu1 %v537_v20  ;;  %1320 = vmatprep.subr.bf16.mxu0 %v530_v33  ;;  %v776_v51 = vadd.f32 %v775_v44, %v774_v19  ;;  %v782_v58 = vadd.f32 %v781_v45, %v780_v23  ;;  %v788_v59 = vadd.f32 %v787_v46, %v786_v26  ;;  %v557_v33 = vld [vmem:[#allocation2 + $0x148] sm:$0xff]  ;;  %v558_v26 = vld [vmem:[#allocation2 + $0x150] sm:$0xff] }
 0x2a0   :  { %v759_v48 = vrot.slane %v758_v32, 1  ;;  %v765_v24 = vrot.slane %v764_v38, 1  ;;  %v771_v36 = vrot.slane %v770_v39, 1  ;;  %1342 = vmatprep.subr.bf16.mxu1 %v546_v27  ;;  %v569_v19 = vpack.c.bf16 %v2019_v22, %v2019_v22  ;;  %v1266_v22 = vld [vmem:[%s2248_s4 + $0x12] ss:$2 sm:$0x3f] }
 0x2a1   :  { %v777_v41 = vrot.slane %v776_v51, 1  ;;  %v783_v0 = vrot.slane %v782_v58, 1  ;;  %v789_v9 = vrot.slane %v788_v59, 1  ;;  %v550_v27 = vld [vmem:[#allocation2 + $0x110] sm:$0xff]  ;;  %v823_v45 = vrot.slane %v1266_v22, %v1878_v12 }
 0x2a2   :  { %v760_v61 = vadd.f32 %v759_v48, %v758_v32  ;;  %v766_v63 = vadd.f32 %v765_v24, %v764_v38  ;;  %v772_v28 = vadd.f32 %v771_v36, %v770_v39  ;;  %1321 = vmatpush3.bf16.msra.mxu0 %v522_v47  ;;  %v1267_v32 = vld [vmem:[%s2248_s4 + $0x13] ss:$2 sm:$0x3f]  ;;  %v819_v39 = vrot.slane %v1266_v22, %v1872_v10 }
 0x2a3   :  { %1343 = vmatpush3.bf16.msra.mxu1 %v538_v52  ;;  %1322 = vmatprep.subr.bf16.mxu0 %v531_v57  ;;  %v778_v3 = vadd.f32 %v777_v41, %v776_v51  ;;  %v784_v35 = vadd.f32 %v783_v0, %v782_v58  ;;  %v790_v30 = vadd.f32 %v789_v9, %v788_v59  ;;  %v559_v38 = vld [vmem:[#allocation2 + $0x158] sm:$0xff]  ;;  %v560_v59 = vld [vmem:[#allocation2 + $0x160] sm:$0xff] }
 0x2a4   :  { %v791_v29 = vmul.f32 0.125, %v760_v61  ;;  %v792_v4 = vmul.f32 0.125, %v766_v63  ;;  %v793_v5 = vmul.f32 0.125, %v772_v28  ;;  %1344 = vmatprep.subr.bf16.mxu1 %v547_v60  ;;  %v827_v48 = vrot.slane %v1266_v22, %v1981_v49  ;;  %v551_v36 = vld [vmem:[#allocation2 + $0x118] sm:$0xff] }
 0x2a5   :  { %v794_v8 = vmul.f32 0.125, %v778_v3  ;;  %v795_v15 = vmul.f32 0.125, %v784_v35  ;;  %v796_v16 = vmul.f32 0.125, %v790_v30  ;;  %v856_v24 = vrot.slane %v1267_v32, %v1872_v10 }
 0x2a6   :  { %v797_v11 = vadd.f32 1e-05, %v791_v29  ;;  %v798_v13 = vadd.f32 1e-05, %v792_v4  ;;  %1323 = vmatpush3.bf16.msra.mxu0 %v523_v2  ;;  %v799_v17 = vadd.f32 1e-05, %v793_v5  ;;  %v831_v57 = vrot.slane %v1266_v22, %v1987_v50 }
 0x2a7   :  { %1345 = vmatpush3.bf16.msra.mxu1 %v539_v6  ;;  %1352 = vmatprep.subr.bf16.mxu0 %v556_v43  ;;  %v800_v20 = vadd.f32 1e-05, %v794_v8  ;;  %v801_v31 = vadd.f32 1e-05, %v795_v15  ;;  %v802_v23 = vadd.f32 1e-05, %v796_v16  ;;  %v860_v58 = vrot.slane %v1267_v32, %v1878_v12 }
 0x2a8   :  { %1560 = vrsqrt.f32 %v797_v11  ;;  %v835_v63 = vrot.slane %v1266_v22, %v1991_v37  ;;  %v864_v28 = vrot.slane %v1267_v32, %v1981_v49  ;;  %v839_v0 = vrot.slane %v1266_v22, %v1995_v54  ;;  %v552_v4 = vld [vmem:[#allocation2 + $0x120] sm:$0xff]  ;;  %v561_v43 = vld [vmem:[#allocation2 + $0x168] sm:$0xff]  ;;  %v562_v11 = vld [vmem:[#allocation2 + $0x170] sm:$0xff] }
 0x2a9   :  { %1562 = vrsqrt.f32 %v798_v13  ;;  %603 = vmatmul.mubr.bf16.vlgmr.msra.gmra.mrb[4].mxu0 %v564_v7  ;;  %v563_v13 = vld [vmem:[#allocation2 + $0x178] sm:$0xff] }
 0x2aa   :  { %1564 = vrsqrt.f32 %v799_v17  ;;  %643 = vmatmul.mubr.bf16.vlgmr.msra.gmra.mrb[4].mxu1 %v566_v14  ;;  %1353 = vmatpush3.bf16.msra.mxu0 %v548_v40  ;;  %v568_v14 = vpack.c.bf16 %v2017_v21, %v2017_v21 }
 0x2ab   :  { %1566 = vrsqrt.f32 %v800_v20  ;;  %1354 = vmatprep.subr.bf16.mxu0 %v557_v33  ;;  %682 = vmatprep.mubr.bf16.mxu0 %v569_v19 }
 0x2ac   :  { %1568 = vrsqrt.f32 %v801_v31 }
 0x2ad   :  { %1570 = vrsqrt.f32 %v802_v23 }
 0x2ae   :  { %1355 = vmatpush3.bf16.msra.mxu0 %v549_v18 }
 0x2af   :  { %1356 = vmatprep.subr.bf16.mxu0 %v558_v26 }
 0x2b2   :  { %v1561_v44 = vpop.eup %1560  ;;  %1357 = vmatpush3.bf16.msra.mxu0 %v550_v27 }
 0x2b3   :  { %v1563_v46 = vpop.eup %1562  ;;  %v809_v47 = vmul.f32 %v1561_v44, %v2086_v53  ;;  %1358 = vmatprep.subr.bf16.mxu0 %v559_v38 }
 0x2b4   :  { %v1565_v51 = vpop.eup %1564  ;;  %v810_v52 = vmul.f32 %v1563_v46, %v2089_v55  ;;  %v868_v55 = vrot.slane %v1267_v32, %v1987_v50 }
 0x2b5   :  { %v1567_v60 = vpop.eup %1566  ;;  %v811_v61 = vmul.f32 %v1565_v51, %v2092_v56  ;;  %v846_v53 = vmul.f32 %v819_v39, %v809_v47  ;;  %v872_v56 = vrot.slane %v1267_v32, %v1991_v37  ;;  %v553_v37 = vld [vmem:[#allocation2 + $0x128] sm:$0xff] }
 0x2b6   :  { %v1569_v41 = vpop.eup %1568  ;;  %v812_v10 = vmul.f32 %v1567_v60, %v2095_v62  ;;  %v847_v9 = vmul.f32 %v823_v45, %v810_v52  ;;  %1359 = vmatpush3.bf16.msra.mxu0 %v551_v36  ;;  %v876_v62 = vrot.slane %v1267_v32, %v1995_v54  ;;  %v555_v54 = vld [vmem:[#allocation2 + $0x138] sm:$0xff] }
 0x2b7   :  { %v1571_v2 = vpop.eup %1570  ;;  %v813_v12 = vmul.f32 %v1569_v41, %v2104_v42  ;;  %v848_v3 = vmul.f32 %v827_v48, %v811_v61  ;;  %v2143_v29 = vadd.f32 %v856_v24, %v846_v53  ;;  %1360 = vmatprep.subr.bf16.mxu0 %v560_v59 }
 0x2b8   :  { %v814_v49 = vmul.f32 %v1571_v2, %v2107_v1  ;;  %v849_v5 = vmul.f32 %v831_v57, %v812_v10  ;;  %v884_v6 = vadd.f32 %v860_v58, %v847_v9  ;;  %v554_v1 = vld [vmem:[#allocation2 + $0x130] sm:$0xff] }
 0x2b9   :  { %v850_v35 = vmul.f32 %v835_v63, %v813_v12  ;;  %v2147_v50 = vadd.f32 %v864_v28, %v848_v3 }
 0x2ba   :  { %v851_v30 = vmul.f32 %v839_v0, %v814_v49  ;;  %v886_v7 = vadd.f32 %v868_v55, %v849_v5  ;;  %1361 = vmatpush3.bf16.msra.mxu0 %v552_v4 }
 0x2bb   :  { %v2149_v42 = vadd.f32 %v872_v56, %v850_v35  ;;  %1362 = vmatprep.subr.bf16.mxu0 %v561_v43 }
 0x2bc   :  { %v2151_v8 = vadd.f32 %v876_v62, %v851_v30 }
 0x2be   :  { %1363 = vmatpush3.bf16.msra.mxu0 %v553_v37 }
 0x2bf   :  { %1364 = vmatprep.subr.bf16.mxu0 %v562_v11 }
 0x2c2   :  { %1365 = vmatpush3.bf16.msra.mxu0 %v554_v1 }
 0x2c3   :  { %1366 = vmatprep.subr.bf16.mxu0 %v563_v13 }
 0x2c6   :  { %1367 = vmatpush3.bf16.msra.mxu0 %v555_v54 }
 0x2c9   :  { %683 = vmatmul.mubr.bf16.vlgmr.msra.gmra.mrb[8].mxu0 %v568_v14 }
 0x37c   :  { %v1324_v15 = vpop.f32.mrb[4].mxu0 }
 0x37d   :  { %v1346_v16 = vpop.f32.mrb[4].mxu1  ;;  %v1325_v17 = vpop.f32.mrb[5].mxu0 }
 0x37e   :  { %v1326_v40 = vadd.f32 %v1325_v17, %v1324_v15  ;;  %v1347_v19 = vpop.f32.mrb[5].mxu1  ;;  %v1327_v20 = vpop.f32.mrb[6].mxu0 }
 0x37f   :  { %v1348_v33 = vadd.f32 %v1347_v19, %v1346_v16  ;;  %v1328_v31 = vpop.f32.mrb[7].mxu0  ;;  %v1349_v23 = vpop.f32.mrb[6].mxu1 }
 0x380   :  { %v1350_v18 = vpop.f32.mrb[7].mxu1 }
 0x381   :  { %v645_v26 = vadd.f32 %v1348_v33, %v1326_v40 }
 0x39c   :  { %v1368_v22 = vpop.f32.mrb[8].mxu0 }
 0x39d   :  { %v1369_v27 = vpop.f32.mrb[9].mxu0 }
 0x39e   :  { %v1370_v32 = vadd.f32 %v1369_v27, %v1368_v22  ;;  %v1371_v38 = vpop.f32.mrb[10].mxu0 }
 0x39f   :  { %v1372_v39 = vpop.f32.mrb[11].mxu0 }
 0x3a0   :  { %v685_v44 = vadd.f32 %v1370_v32, %v645_v26 }
 0x3a2   :  { %v2156_v21 = vadd.f32 %v685_v44, %v2022_v34 }
 0x3a3   :  { %1703 = dma.done.wait [#allocation3 + $0x1], 6144 }
 0x3a4   :  { %1704 = vsyncadd [#allocation3 + $0x1], 4294961152  ;;  %v940_v45 = vpack.c.bf16 %v884_v6, %v884_v6  ;;  %v942_v46 = vpack.c.bf16 %v886_v7, %v886_v7  ;;  %v899_v47 = vld [vmem:[#allocation2 + $0x1c0] sm:$0xff]  ;;  %v900_v51 = vld [vmem:[#allocation2 + $0x1c8] sm:$0xff]  ;;  %v939_v37 = vpack.c.bf16 %v2143_v29, %v2143_v29  ;;  %v941_v11 = vpack.c.bf16 %v2147_v50, %v2147_v50 }
 0x3a5   :  { %v915_v48 = vld [vmem:[#allocation2 + $0x240] sm:$0xff]  ;;  %1374 = vmatprep.subr.bf16.mxu1 %v899_v47  ;;  %v916_v52 = vld [vmem:[#allocation2 + $0x248] sm:$0xff]  ;;  %v901_v58 = vld [vmem:[#allocation2 + $0x1d0] sm:$0xff]  ;;  %v944_v1 = vpack.c.bf16 %v2151_v8, %v2151_v8  ;;  %v943_v23 = vpack.c.bf16 %v2149_v42, %v2149_v42  ;;  %v1710_v27 = vmov 0.0|0.0   ;;  %vm1191_vm1 = vcmask 130048  }
 0x3a6   :  { %977 = vmatprep.mubr.bf16.mxu1 %v940_v45  ;;  %1017 = vmatprep.mubr.bf16.mxu0 %v942_v46  ;;  %v891_v24 = vld [vmem:[#allocation2 + $0x180] sm:$0xff]  ;;  %v892_v34 = vld [vmem:[#allocation2 + $0x188] sm:$0xff]  ;;  %v917_v59 = vld [vmem:[#allocation2 + $0x250] sm:$0xff]  ;;  %vm1239_vm2 = vcmask 7168  }
 0x3a7   :  { %1396 = vmatprep.subr.bf16.mxu0 %v915_v48  ;;  %v907_v36 = vld [vmem:[#allocation2 + $0x200] sm:$0xff]  ;;  %1375 = vmatpush3.bf16.msra.mxu1 %v891_v24  ;;  %v908_v57 = vld [vmem:[#allocation2 + $0x208] sm:$0xff]  ;;  %v893_v60 = vld [vmem:[#allocation2 + $0x190] sm:$0xff] }
 0x3a8   :  { %1397 = vmatpush3.bf16.msra.mxu0 %v907_v36  ;;  %1376 = vmatprep.subr.bf16.mxu1 %v900_v51  ;;  %v909_v61 = vld [vmem:[#allocation2 + $0x210] sm:$0xff]  ;;  %v902_v63 = vld [vmem:[#allocation2 + $0x1d8] sm:$0xff]  ;;  %v903_v10 = vld [vmem:[#allocation2 + $0x1e0] sm:$0xff] }
 0x3a9   :  { %1398 = vmatprep.subr.bf16.mxu0 %v916_v52  ;;  %v918_v53 = vld [vmem:[#allocation2 + $0x258] sm:$0xff]  ;;  %v919_v0 = vld [vmem:[#allocation2 + $0x260] sm:$0xff]  ;;  %v904_v2 = vld [vmem:[#allocation2 + $0x1e8] sm:$0xff] }
 0x3aa   :  { %v894_v28 = vld [vmem:[#allocation2 + $0x198] sm:$0xff]  ;;  %v895_v9 = vld [vmem:[#allocation2 + $0x1a0] sm:$0xff]  ;;  %v920_v12 = vld [vmem:[#allocation2 + $0x268] sm:$0xff] }
 0x3ab   :  { %1377 = vmatpush3.bf16.msra.mxu1 %v892_v34  ;;  %v910_v41 = vld [vmem:[#allocation2 + $0x218] sm:$0xff]  ;;  %v911_v55 = vld [vmem:[#allocation2 + $0x220] sm:$0xff]  ;;  %v896_v3 = vld [vmem:[#allocation2 + $0x1a8] sm:$0xff] }
 0x3ac   :  { %1399 = vmatpush3.bf16.msra.mxu0 %v908_v57  ;;  %1378 = vmatprep.subr.bf16.mxu1 %v901_v58  ;;  %v912_v56 = vld [vmem:[#allocation2 + $0x228] sm:$0xff]  ;;  %v905_v4 = vld [vmem:[#allocation2 + $0x1f0] sm:$0xff]  ;;  %v906_v6 = vld [vmem:[#allocation2 + $0x1f8] sm:$0xff] }
 0x3ad   :  { %1400 = vmatprep.subr.bf16.mxu0 %v917_v59  ;;  %v921_v49 = vld [vmem:[#allocation2 + $0x270] sm:$0xff]  ;;  %v922_v43 = vld [vmem:[#allocation2 + $0x278] sm:$0xff]  ;;  %v931_v7 = vld [vmem:[#allocation2 + $0x2c0] sm:$0xff] }
 0x3ae   :  { %v897_v5 = vld [vmem:[#allocation2 + $0x1b0] sm:$0xff]  ;;  %v898_v35 = vld [vmem:[#allocation2 + $0x1b8] sm:$0xff]  ;;  %v923_v13 = vld [vmem:[#allocation2 + $0x280] sm:$0xff] }
 0x3af   :  { %1379 = vmatpush3.bf16.msra.mxu1 %v893_v60  ;;  %v913_v62 = vld [vmem:[#allocation2 + $0x230] sm:$0xff]  ;;  %v914_v30 = vld [vmem:[#allocation2 + $0x238] sm:$0xff]  ;;  %v932_v54 = vld [vmem:[#allocation2 + $0x2c8] sm:$0xff] }
 0x3b0   :  { %1401 = vmatpush3.bf16.msra.mxu0 %v909_v61  ;;  %1380 = vmatprep.subr.bf16.mxu1 %v902_v63  ;;  %v924_v14 = vld [vmem:[#allocation2 + $0x288] sm:$0xff]  ;;  %v933_v29 = vld [vmem:[#allocation2 + $0x2d0] sm:$0xff]  ;;  %v934_v15 = vld [vmem:[#allocation2 + $0x2d8] sm:$0xff] }
 0x3b1   :  { %1402 = vmatprep.subr.bf16.mxu0 %v918_v53  ;;  %v925_v50 = vld [vmem:[#allocation2 + $0x290] sm:$0xff]  ;;  %v926_v8 = vld [vmem:[#allocation2 + $0x298] sm:$0xff]  ;;  %v935_v16 = vld [vmem:[#allocation2 + $0x2e0] sm:$0xff] }
 0x3b2   :  { %v927_v17 = vld [vmem:[#allocation2 + $0x2a0] sm:$0xff]  ;;  %v936_v40 = vld [vmem:[#allocation2 + $0x2e8] sm:$0xff]  ;;  %v937_v20 = vld [vmem:[#allocation2 + $0x2f0] sm:$0xff] }
 0x3b3   :  { %1381 = vmatpush3.bf16.msra.mxu1 %v894_v28  ;;  %v928_v19 = vld [vmem:[#allocation2 + $0x2a8] sm:$0xff]  ;;  %v938_v33 = vld [vmem:[#allocation2 + $0x2f8] sm:$0xff]  ;;  %v1098_v18 = vld [vmem:[%s2250_s6] sm:$0xff] }
 0x3b4   :  { %1403 = vmatpush3.bf16.msra.mxu0 %v910_v41  ;;  %1382 = vmatprep.subr.bf16.mxu1 %v903_v10  ;;  %v930_v31 = vld [vmem:[#allocation2 + $0x2b8] sm:$0xff]  ;;  %v1099_v26 = vld [vmem:[%s2250_s6 + $0x8] sm:$0xff]  ;;  %v1100_v32 = vld [vmem:[%s2250_s6 + $0x10] sm:$0xff] }
 0x3b5   :  { %1404 = vmatprep.subr.bf16.mxu0 %v919_v0  ;;  %v1513_v22 = vpack.c.bf16 %v1099_v26, %v1098_v18  ;;  %v1101_v42 = vld [vmem:[%s2250_s6 + $0x18] sm:$0xff]  ;;  %v1102_v39 = vld [vmem:[%s2250_s6 + $0x20] sm:$0xff]  ;;  %v1103_v44 = vld [vmem:[%s2250_s6 + $0x28] sm:$0xff] }
 0x3b6   :  { %v1516_v38 = vpack.c.bf16 %v1101_v42, %v1100_v32  ;;  %v1519_v45 = vpack.c.bf16 %v1103_v44, %v1102_v39  ;;  %v1104_v46 = vld [vmem:[%s2250_s6 + $0x30] sm:$0xff]  ;;  %v1105_v47 = vld [vmem:[%s2250_s6 + $0x38] sm:$0xff]  ;;  %v1106_v24 = vld [vmem:[%s2250_s6 + $0x40] sm:$0xff] }
 0x3b7   :  { %1383 = vmatpush3.bf16.msra.mxu1 %v895_v9  ;;  %v1522_v48 = vpack.c.bf16 %v1105_v47, %v1104_v46  ;;  %v1107_v36 = vld [vmem:[%s2250_s6 + $0x48] sm:$0xff]  ;;  %v1108_v52 = vld [vmem:[%s2250_s6 + $0x50] sm:$0xff]  ;;  %v1109_v34 = vld [vmem:[%s2250_s6 + $0x58] sm:$0xff] }
 0x3b8   :  { %1405 = vmatpush3.bf16.msra.mxu0 %v911_v55  ;;  %1384 = vmatprep.subr.bf16.mxu1 %v904_v2  ;;  %v1525_v51 = vpack.c.bf16 %v1107_v36, %v1106_v24  ;;  %v1528_v57 = vpack.c.bf16 %v1109_v34, %v1108_v52  ;;  %v1110_v58 = vld [vmem:[%s2250_s6 + $0x60] sm:$0xff]  ;;  %v1111_v59 = vld [vmem:[%s2250_s6 + $0x68] sm:$0xff]  ;;  %v1112_v61 = vld [vmem:[%s2250_s6 + $0x70] sm:$0xff] }
 0x3b9   :  { %1406 = vmatprep.subr.bf16.mxu0 %v920_v12  ;;  %v1531_v60 = vpack.c.bf16 %v1111_v59, %v1110_v58  ;;  %v1113_v63 = vld [vmem:[%s2250_s6 + $0x78] sm:$0xff] }
 0x3ba   :  { %v1534_v53 = vpack.c.bf16 %v1113_v63, %v1112_v61 }
 0x3bb   :  { %1385 = vmatpush3.bf16.msra.mxu1 %v896_v3 }
 0x3bc   :  { %1407 = vmatpush3.bf16.msra.mxu0 %v912_v56  ;;  %1386 = vmatprep.subr.bf16.mxu1 %v905_v4 }
 0x3bd   :  { %1408 = vmatprep.subr.bf16.mxu0 %v921_v49 }
 0x3bf   :  { %1387 = vmatpush3.bf16.msra.mxu1 %v897_v5 }
 0x3c0   :  { %1409 = vmatpush3.bf16.msra.mxu0 %v913_v62  ;;  %1388 = vmatprep.subr.bf16.mxu1 %v906_v6 }
 0x3c1   :  { %1410 = vmatprep.subr.bf16.mxu0 %v922_v43 }
 0x3c3   :  { %1389 = vmatpush3.bf16.msra.mxu1 %v898_v35 }
 0x3c4   :  { %1411 = vmatpush3.bf16.msra.mxu0 %v914_v30  ;;  %1418 = vmatprep.subr.bf16.mxu1 %v931_v7 }
 0x3c5   :  { %1512 = vmatprep.subr.bf16.mxu0 %v1710_v27 }
 0x3c6   :  { %978 = vmatmul.mubr.bf16.vlgmr.msra.gmra.mrb[8].mxu1 %v939_v37 }
 0x3c7   :  { %1018 = vmatmul.mubr.bf16.vlgmr.msra.gmra.mrb[12].mxu0 %v941_v11  ;;  %1419 = vmatpush3.bf16.msra.mxu1 %v923_v13 }
 0x3c8   :  { %1057 = vmatprep.mubr.bf16.mxu1 %v944_v1  ;;  %1420 = vmatprep.subr.bf16.mxu1 %v932_v54 }
 0x3c9   :  { %1509 = vmatprep.mubr.msk.f32.mxu0 %vm1709_vm0, %v1708_v25  ;;  %v929_v25 = vld [vmem:[#allocation2 + $0x2b0] sm:$0xff]  ;;  %1514 = vmatpush3.bf16.msra.mxu0 %v1513_v22 }
 0x3ca   :  { %1515 = vmatprep.subr.bf16.mxu0 %v1710_v27 }
 0x3cb   :  { %1421 = vmatpush3.bf16.msra.mxu1 %v924_v14 }
 0x3cc   :  { %1422 = vmatprep.subr.bf16.mxu1 %v933_v29 }
 0x3cd   :  { %1517 = vmatpush3.bf16.msra.mxu0 %v1516_v38 }
 0x3ce   :  { %1518 = vmatprep.subr.bf16.mxu0 %v1710_v27 }
 0x3cf   :  { %1423 = vmatpush3.bf16.msra.mxu1 %v925_v50 }
 0x3d0   :  { %1424 = vmatprep.subr.bf16.mxu1 %v934_v15 }
 0x3d1   :  { %1520 = vmatpush3.bf16.msra.mxu0 %v1519_v45 }
 0x3d2   :  { %1521 = vmatprep.subr.bf16.mxu0 %v1710_v27 }
 0x3d3   :  { %1425 = vmatpush3.bf16.msra.mxu1 %v926_v8 }
 0x3d4   :  { %1426 = vmatprep.subr.bf16.mxu1 %v935_v16 }
 0x3d5   :  { %1523 = vmatpush3.bf16.msra.mxu0 %v1522_v48 }
 0x3d6   :  { %1524 = vmatprep.subr.bf16.mxu0 %v1710_v27 }
 0x3d7   :  { %1427 = vmatpush3.bf16.msra.mxu1 %v927_v17 }
 0x3d8   :  { %1428 = vmatprep.subr.bf16.mxu1 %v936_v40 }
 0x3d9   :  { %1526 = vmatpush3.bf16.msra.mxu0 %v1525_v51 }
 0x3da   :  { %1527 = vmatprep.subr.bf16.mxu0 %v1710_v27 }
 0x3db   :  { %1429 = vmatpush3.bf16.msra.mxu1 %v928_v19 }
 0x3dc   :  { %1430 = vmatprep.subr.bf16.mxu1 %v937_v20 }
 0x3dd   :  { %1529 = vmatpush3.bf16.msra.mxu0 %v1528_v57 }
 0x3de   :  { %1530 = vmatprep.subr.bf16.mxu0 %v1710_v27 }
 0x3df   :  { %1431 = vmatpush3.bf16.msra.mxu1 %v929_v25 }
 0x3e0   :  { %1432 = vmatprep.subr.bf16.mxu1 %v938_v33 }
 0x3e1   :  { %1532 = vmatpush3.bf16.msra.mxu0 %v1531_v60 }
 0x3e2   :  { %1533 = vmatprep.subr.bf16.mxu0 %v1710_v27  ;;  %v1270_v27 = vld [vmem:[%s2251_s7 + $0x3] ss:$0 sm:$0xff] }
 0x3e3   :  { %1433 = vmatpush3.bf16.msra.mxu1 %v930_v31 }
 0x3e5   :  { %1535 = vmatpush3.bf16.msra.mxu0 %v1534_v53 }
 0x3e6   :  { %1058 = vmatmul.mubr.bf16.vlgmr.msra.gmra.mrb[12].mxu1 %v943_v23  ;;  %v1269_v23 = vld [vmem:[%s2251_s7 + $0x2] ss:$0 sm:$0xff] }
 0x499   :  { %v1390_v28 = vpop.f32.mrb[8].mxu1 }
 0x49a   :  { %v1412_v41 = vpop.f32.mrb[12].mxu0  ;;  %v1391_v10 = vpop.f32.mrb[9].mxu1 }
 0x49b   :  { %v1413_v0 = vpop.f32.mrb[13].mxu0  ;;  %v1392_v9 = vadd.f32 %v1391_v10, %v1390_v28  ;;  %v1393_v2 = vpop.f32.mrb[10].mxu1  ;;  %v1271_v10 = vld [vmem:[%s2251_s7 + $0x4] ss:$0 sm:$0xff] }
 0x49c   :  { %v1414_v55 = vadd.f32 %v1413_v0, %v1412_v41  ;;  %v1415_v12 = vpop.f32.mrb[14].mxu0  ;;  %v1394_v3 = vpop.f32.mrb[11].mxu1 }
 0x49d   :  { %v1416_v56 = vpop.f32.mrb[15].mxu0  ;;  %v1273_v12 = vld [vmem:[%s2251_s7 + $0x6] ss:$0 sm:$0xff] }
 0x49e   :  { %v1020_v4 = vadd.f32 %v1414_v55, %v1392_v9  ;;  %v1272_v9 = vld [vmem:[%s2251_s7 + $0x5] ss:$0 sm:$0xff] }
 0x4b9   :  { %v1434_v49 = vpop.f32.mrb[12].mxu1 }
 0x4ba   :  { %v1435_v5 = vpop.f32.mrb[13].mxu1 }
 0x4bb   :  { %v1436_v62 = vadd.f32 %v1435_v5, %v1434_v49  ;;  %v1437_v6 = vpop.f32.mrb[14].mxu1  ;;  %v1274_v49 = vld [vmem:[%s2251_s7 + $0x7] ss:$0 sm:$0xff] }
 0x4bc   :  { %v1438_v43 = vpop.f32.mrb[15].mxu1 }
 0x4bd   :  { %v1060_v35 = vadd.f32 %v1436_v62, %v1020_v4 }
 0x4bf   :  { %v1065_v30 = vadd.f32 %v1060_v35, %v2156_v21  ;;  %v1268_v21 = vld [vmem:[%s2251_s7 + $0x1] ss:$0 sm:$0xff] }
 0x4c1   :  { %v1068_v7 = vrot.slane %v1065_v30, 4 }
 0x4c3   :  { %v1069_v37 = vadd.f32 %v1068_v7, %v1065_v30 }
 0x4c5   :  { %v1070_v11 = vrot.slane %v1069_v37, 2 }
 0x4c7   :  { %v1071_v1 = vadd.f32 %v1070_v11, %v1069_v37 }
 0x4c9   :  { %v1072_v13 = vrot.slane %v1071_v1, 1 }
 0x4cb   :  { %v1073_v54 = vadd.f32 %v1072_v13, %v1071_v1 }
 0x4cd   :  { %v1074_v14 = vmul.f32 0.125, %v1073_v54 }
 0x4cf   :  { %v1075_v29 = vsub.f32 %v1065_v30, %v1074_v14 }
 0x4d1   :  { %v1076_v50 = vmul.f32 %v1075_v29, %v1075_v29 }
 0x4d3   :  { %v1077_v15 = vrot.slane %v1076_v50, 4 }
 0x4d5   :  { %v1078_v8 = vadd.f32 %v1077_v15, %v1076_v50 }
 0x4d7   :  { %v1079_v16 = vrot.slane %v1078_v8, 2 }
 0x4d9   :  { %v1080_v17 = vadd.f32 %v1079_v16, %v1078_v8 }
 0x4db   :  { %v1081_v40 = vrot.slane %v1080_v17, 1 }
 0x4dd   :  { %v1082_v19 = vadd.f32 %v1081_v40, %v1080_v17 }
 0x4df   :  { %v1083_v20 = vmul.f32 0.125, %v1082_v19 }
 0x4e1   :  { %v1084_v25 = vadd.f32 1e-05, %v1083_v20 }
 0x4e3   :  { %1572 = vrsqrt.f32 %v1084_v25 }
 0x4ed   :  { %v1573_v33 = vpop.eup %1572 }
 0x4ee   :  { %v1086_v31 = vmul.f32 %v1573_v33, %v1075_v29 }
 0x4f0   :  { %v1091_v18 = vmul.f32 %v1268_v21, %v1086_v31 }
 0x4f2   :  { %v1096_v26 = vadd.f32 %v1269_v23, %v1091_v18 }
 0x4f4   :  { %v1097_v22 = vmax.f32 %v1096_v26, 0.0 }
 0x4f6   :  { %1510 = vmatmul.mubr.f32.vlgmr.msra.gmra.mrb[16].mxu0 %v1097_v22 }
 0x5c9   :  { %v1185_v32 = vpop.f32.mrb[16].mxu0 }
 0x5ca   :  { %v1186_v42 = vadd.f32 %v1270_v27, %v1185_v32  ;;  %v1511_v38 = vpop.f32.mrb[17].mxu0 }
 0x5cc   :  { %v1192_v39 = vsel %vm1191_vm1, %v1186_v42, 0.0 }
 0x5cd   :  { %v1193_v44 = vrot.slane %v1192_v39, 4 }
 0x5cf   :  { %v1194_v45 = vadd.f32 %v1193_v44, %v1192_v39 }
 0x5d1   :  { %v1195_v46 = vrot.slane %v1194_v45, 2 }
 0x5d3   :  { %v1196_v47 = vadd.f32 %v1195_v46, %v1194_v45 }
 0x5d5   :  { %v1197_v48 = vrot.slane %v1196_v47, 1 }
 0x5d7   :  { %v1198_v24 = vadd.f32 %v1197_v48, %v1196_v47 }
 0x5d9   :  { %v1199_v36 = vmul.f32 0.125, %v1198_v24 }
 0x5db   :  { %v1200_v51 = vsub.f32 %v1186_v42, %v1199_v36 }
 0x5dd   :  { %v1201_v52 = vmul.f32 %v1200_v51, %v1200_v51 }
 0x5df   :  { %v1202_v34 = vsel %vm1191_vm1, %v1201_v52, 0.0 }
 0x5e0   :  { %v1203_v57 = vrot.slane %v1202_v34, 4 }
 0x5e2   :  { %v1204_v58 = vadd.f32 %v1203_v57, %v1202_v34 }
 0x5e4   :  { %v1205_v59 = vrot.slane %v1204_v58, 2 }
 0x5e6   :  { %v1206_v60 = vadd.f32 %v1205_v59, %v1204_v58 }
 0x5e8   :  { %v1207_v61 = vrot.slane %v1206_v60, 1 }
 0x5ea   :  { %v1208_v63 = vadd.f32 %v1207_v61, %v1206_v60 }
 0x5ec   :  { %v1209_v53 = vmul.f32 0.125, %v1208_v63 }
 0x5ee   :  { %v1210_v28 = vadd.f32 1e-05, %v1209_v53 }
 0x5f0   :  { %1574 = vrsqrt.f32 %v1210_v28 }
 0x5fa   :  { %v1575_v41 = vpop.eup %1574 }
 0x5fb   :  { %v1212_v0 = vmul.f32 %v1575_v41, %v1200_v51 }
 0x5fd   :  { %v1217_v55 = vmul.f32 %v1271_v10, %v1212_v0 }
 0x5ff   :  { %v1222_v2 = vadd.f32 %v1272_v9, %v1217_v55 }
 0x601   :  { %v1223_v3 = vmax.f32 %v1222_v2, 0.0 }
 0x603   :  { %v1229_v56 = vmul.f32 %v1273_v12, %v1223_v3 }
 0x605   :  { %v1230_v4 = vsel %vm1191_vm1, %v1229_v56, 0.0 }
 0x606   :  { %1231 = vadd.xlane.f32.xlu0 %v1230_v4 }
 0x693   :  { %v1232_v5 = vpop.xlane.xlu0 %1231 }
 0x694   :  { %v1238_v62 = vadd.f32 %v1274_v49, %v1232_v5 }
 0x696   :  { %1240 = vst.msk [vmem:[%s2252_s8] sm:$0xff] %vm1239_vm2, %v1238_v62 }
 0x697   :  { %1245 = vsyncpa [#allocation5], 1 }
 0x698   :  { %1246 = vsyncmov [#allocation3] }
 0x69b   :  { %s1247_s24 = vpop.sfrf %1246 }
 0x69c   :  { %p1275_p12 = scmp.ne.s32.totalorder %s1247_s24, 0 }
 0x69e   :  { %1251 = shalt.err (%p1275_p12)  }
 0x69f   :  { %1253 = vsyncmov [#allocation3 + $0x1] }
 0x6a2   :  { %s1254_s20 = vpop.sfrf %1253 }
 0x6a3   :  { %p1276_p4 = scmp.ne.s32.totalorder %s1254_s20, 0 }
 0x6a5   :  { %1258 = shalt.err (%p1276_p4)  }

</bundles_post_ra>
